<compile_context>
chip_gen: v6e
topology: v6e:2x2x1
jax: 0.10.0
libtpu: 0.0.40
codegen_flags: <defaults>
</compile_context>

<pallas_src>
import functools

import jax
import jax.numpy as jnp
from jax.experimental import pallas as pl
from jax.experimental.pallas import tpu as pltpu


# ---------------------------------------------------------------------------
# in-kernel helpers
# ---------------------------------------------------------------------------
def _layernorm(x, gamma, beta, eps=1e-5):
    mean = jnp.mean(x, axis=-1, keepdims=True)
    var = jnp.mean((x - mean) ** 2, axis=-1, keepdims=True)
    return (x - mean) * jax.lax.rsqrt(var + eps) * gamma + beta


def _gelu(x):
    # TODO(synk): PyTorch nn.GELU() default is the exact erf GELU; the tanh
    # approximation (|err| ~1e-3) is used so the transcendental runs on the EUP.
    c = 0.7978845608028654  # sqrt(2/pi)
    return 0.5 * x * (1.0 + jnp.tanh(c * (x + 0.044715 * x * x * x)))


# ---------------------------------------------------------------------------
# fused transformer kernel: one grid step == one layer, activation resident
# ---------------------------------------------------------------------------
def _transformer_kernel(x_ref, bdmask_ref, segsum_ref,
                        ag_ref, ab_ref, wqkv_ref, bqkv_ref, wo_ref, bo_ref,
                        mg_ref, mb_ref, w1_ref, b1_ref, w2_ref, b2_ref,
                        o_ref, *, batch, tokens, heads, scale):
    layer = pl.program_id(0)

    @pl.when(layer == 0)
    def _():
        o_ref[...] = x_ref[...]          # bring the activation into VMEM once

    x = o_ref[...]                       # (B*N, D) f32, resident across layers
    d = x.shape[-1]
    n = tokens

    bd_mask = bdmask_ref[...]            # (heads*N, D)        block-diag 0/1 mask
    seg_sum = segsum_ref[...]            # (heads*N, heads*N)  per-head block-sum

    # ---------------- Residual(LayerNormalize(Attention)) ----------------
    ln = _layernorm(x, ag_ref[0], ab_ref[0])
    qkv = jnp.dot(ln, wqkv_ref[0], preferred_element_type=jnp.float32) + bqkv_ref[0]
    q = qkv[:, 0 * d:1 * d]
    k = qkv[:, 1 * d:2 * d]
    v = qkv[:, 2 * d:3 * d]

    ctx_rows = []
    for b in range(batch):               # batch is tiny & static
        qb = q[b * n:(b + 1) * n, :]
        kb = k[b * n:(b + 1) * n, :]
        vb = v[b * n:(b + 1) * n, :]
        # block-diagonal "wide" K/V: row r = h*N + j keeps only head-h columns
        k_wide = bd_mask * jnp.concatenate([kb] * heads, axis=0)   # (H*N, D)
        v_wide = bd_mask * jnp.concatenate([vb] * heads, axis=0)   # (H*N, D)
        # dots[i, h*N + j] = <q_h[i], k_h[j]>  (contract last dims, no .T)
        dots = jax.lax.dot_general(
            qb, k_wide, dimension_numbers=(((1,), (1,)), ((), ())),
            preferred_element_type=jnp.float32) * scale            # (N, H*N)
        # global row-max is a per-(row, head-block) constant -> softmax unchanged
        dots = dots - jnp.max(dots, axis=-1, keepdims=True)
        p = jnp.exp(dots)
        denom = jnp.dot(p, seg_sum, preferred_element_type=jnp.float32)
        attn = p * pl.reciprocal(denom, approx=True)               # per-head softmax
        # ctx[i, h*dh + e] = sum_j attn_h[i, j] v_h[j, e]  -> already 'n (h d)'
        ctx_rows.append(jnp.dot(attn, v_wide, preferred_element_type=jnp.float32))
    ctx = jnp.concatenate(ctx_rows, axis=0)                        # (B*N, D)

    attn_out = jnp.dot(ctx, wo_ref[0], preferred_element_type=jnp.float32) + bo_ref[0]
    x = x + attn_out                     # do1 dropout = identity (eval)

    # ---------------- Residual(LayerNormalize(MLP_Block)) ----------------
    ln2 = _layernorm(x, mg_ref[0], mb_ref[0])
    h = jnp.dot(ln2, w1_ref[0], preferred_element_type=jnp.float32) + b1_ref[0]
    h = _gelu(h)
    mlp_out = jnp.dot(h, w2_ref[0], preferred_element_type=jnp.float32) + b2_ref[0]

    o_ref[...] = x + mlp_out             # VMEM write; HBM writeback once at grid end


# ---------------------------------------------------------------------------
# wrapper
# ---------------------------------------------------------------------------
def transformer_forward(x, params, *, heads):
    B, N, D = x.shape
    depth = params["wqkv"].shape[0]
    H = params["w1"].shape[-1]
    dh = D // heads
    HN = heads * N
    scale = float(D) ** -0.5             # module uses dim**-0.5 (not head_dim**-0.5)

    # constant block-diagonal helpers, hoisted out of kernel & layer loop
    r = jnp.arange(HN)
    bd_mask = (r[:, None] // N == jnp.arange(D)[None, :] // dh).astype(jnp.float32)
    seg_sum = (r[:, None] // N == r[None, :] // N).astype(jnp.float32)

    x2 = x.reshape(B * N, D).astype(jnp.float32)

    kernel = functools.partial(_transformer_kernel, batch=B, tokens=N,
                               heads=heads, scale=scale)

    def vec_spec(dim):
        return pl.BlockSpec((1, 1, dim), lambda l: (l, 0, 0))

    def mat_spec(din, dout):
        return pl.BlockSpec((1, din, dout), lambda l: (l, 0, 0))

    def const_spec(shape):
        return pl.BlockSpec(shape, lambda l: tuple(0 for _ in shape))

    out = pl.pallas_call(
        kernel,
        out_shape=jax.ShapeDtypeStruct((B * N, D), jnp.float32),
        grid=(depth,),
        in_specs=[
            const_spec((B * N, D)),       # x (fetched once)
            const_spec((HN, D)),          # block-diag mask
            const_spec((HN, HN)),         # per-head block-sum matrix
            vec_spec(D), vec_spec(D),     # attn LN gamma / beta
            mat_spec(D, 3 * D), vec_spec(3 * D),   # to_qkv
            mat_spec(D, D), vec_spec(D),  # nn1
            vec_spec(D), vec_spec(D),     # mlp LN gamma / beta
            mat_spec(D, H), vec_spec(H),  # mlp W1
            mat_spec(H, D), vec_spec(D),  # mlp W2
        ],
        out_specs=const_spec((B * N, D)),
        compiler_params=pltpu.CompilerParams(
            dimension_semantics=("arbitrary",)),   # sequential layer dependency
    )(x2, bd_mask, seg_sum,
      params["a_g"], params["a_b"], params["wqkv"], params["bqkv"],
      params["wo"], params["bo"],
      params["m_g"], params["m_b"], params["w1"], params["b1"],
      params["w2"], params["b2"])

    return out.reshape(B, N, D).astype(x.dtype)


# ---------------------------------------------------------------------------
# deterministic parameter init (stacked along the layer axis)
# weights stored as (in, out): kernel computes x @ W + b (== PyTorch x @ W.T + b)
# ---------------------------------------------------------------------------
def init_params(key, dim, depth, mlp_dim):
    def linear(k, fin, fout):
        kw, kb = jax.random.split(k)
        bound = 1.0 / (fin ** 0.5)
        w = jax.random.uniform(kw, (depth, fin, fout), jnp.float32, -bound, bound)
        b = jax.random.uniform(kb, (depth, 1, fout), jnp.float32, -bound, bound)
        return w, b

    key, k1, k2, k3, k4 = jax.random.split(key, 5)
    wqkv, bqkv = linear(k1, dim, 3 * dim)
    wo, bo = linear(k2, dim, dim)
    w1, b1 = linear(k3, dim, mlp_dim)
    w2, b2 = linear(k4, mlp_dim, dim)
    ones = jnp.ones((depth, 1, dim), jnp.float32)
    zeros = jnp.zeros((depth, 1, dim), jnp.float32)
    # NOTE: Attention.to_kv / .sr (Conv2d) / .norm / .act are only used when
    # use_SR=True, which Transformer.forward never sets; not materialized here.
    return dict(a_g=ones, a_b=zeros, wqkv=wqkv, bqkv=bqkv, wo=wo, bo=bo,
                m_g=ones, m_b=zeros, w1=w1, b1=b1, w2=w2, b2=b2)


# ---------------------------------------------------------------------------
# pure-JAX reference (mirrors the PyTorch module, eval mode, mask=None)
# ---------------------------------------------------------------------------
def reference_forward(x, params, *, heads):
    B, N, D = x.shape
    dh = D // heads
    depth = params["wqkv"].shape[0]
    scale = float(D) ** -0.5

    def layernorm(v, g, b):
        m = v.mean(-1, keepdims=True)
        var = ((v - m) ** 2).mean(-1, keepdims=True)
        return (v - m) * jax.lax.rsqrt(var + 1e-5) * g + b

    def gelu(v):
        return 0.5 * v * (1.0 + jnp.tanh(0.7978845608028654 * (v + 0.044715 * v ** 3)))

    for l in range(depth):
        ln = layernorm(x, params["a_g"][l, 0], params["a_b"][l, 0])
        qkv = ln @ params["wqkv"][l] + params["bqkv"][l, 0]
        q, k, v = jnp.split(qkv, 3, axis=-1)
        sh = lambda t: t.reshape(B, N, heads, dh).transpose(0, 2, 1, 3)
        qh, kh, vh = sh(q), sh(k), sh(v)
        dots = jnp.einsum('bhid,bhjd->bhij', qh, kh) * scale
        attn = jax.nn.softmax(dots, axis=-1)
        out = jnp.einsum('bhij,bhjd->bhid', attn, vh)
        out = out.transpose(0, 2, 1, 3).reshape(B, N, D)
        out = out @ params["wo"][l] + params["bo"][l, 0]
        x = x + out
        ln2 = layernorm(x, params["m_g"][l, 0], params["m_b"][l, 0])
        h = gelu(ln2 @ params["w1"][l] + params["b1"][l, 0])
        x = x + h @ params["w2"][l] + params["b2"][l, 0]
    return x


if __name__ == "__main__":
    B, N, DIM, HEADS, MLP_DIM, DEPTH = 2, 16, 32, 8, 64, 2

    key = jax.random.PRNGKey(0)
    kx, kp = jax.random.split(key)
    x = jax.random.normal(kx, (B, N, DIM), jnp.float32)
    params = init_params(kp, DIM, DEPTH, MLP_DIM)

    y = transformer_forward(x, params, heads=HEADS)
    jax.block_until_ready(y)
    assert y.shape == (B, N, DIM) and y.dtype == jnp.float32

    with jax.default_matmul_precision("highest"):
        y_ref = reference_forward(x, params, heads=HEADS)
    err = float(jnp.max(jnp.abs(y - y_ref)))
    assert jnp.allclose(y, y_ref, atol=5e-3, rtol=5e-3), err

    print("KERNEL_OK")
</pallas_src>

<mosaic_0001>
module attributes {stable_mosaic.version = 11 : i64} {
  func.func @_transformer_kernel(%arg0: i32, %arg1: memref<32x32xf32, #tpu.memory_space<vmem>>, %arg2: memref<128x32xf32, #tpu.memory_space<vmem>>, %arg3: memref<128x128xf32, #tpu.memory_space<vmem>>, %arg4: memref<1x1x32xf32, #tpu.memory_space<vmem>>, %arg5: memref<1x1x32xf32, #tpu.memory_space<vmem>>, %arg6: memref<1x32x96xf32, #tpu.memory_space<vmem>>, %arg7: memref<1x1x96xf32, #tpu.memory_space<vmem>>, %arg8: memref<1x32x32xf32, #tpu.memory_space<vmem>>, %arg9: memref<1x1x32xf32, #tpu.memory_space<vmem>>, %arg10: memref<1x1x32xf32, #tpu.memory_space<vmem>>, %arg11: memref<1x1x32xf32, #tpu.memory_space<vmem>>, %arg12: memref<1x32x64xf32, #tpu.memory_space<vmem>>, %arg13: memref<1x1x64xf32, #tpu.memory_space<vmem>>, %arg14: memref<1x64x32xf32, #tpu.memory_space<vmem>>, %arg15: memref<1x1x32xf32, #tpu.memory_space<vmem>>, %arg16: memref<32x32xf32, #tpu.memory_space<vmem>>) attributes {dimension_semantics = [#tpu.dimension_semantics<arbitrary>], iteration_bounds = array<i64: 2>, scalar_prefetch = 0 : i64, scratch_operands = 0 : i64, tpu.core_type = #tpu.core_type<tc>, window_params = [{pipeline_mode = #tpu.pipeline_mode<synchronous>, transform_indices = @transform_0, window_bounds = array<i64: 32, 32>}, {pipeline_mode = #tpu.pipeline_mode<synchronous>, transform_indices = @transform_1, window_bounds = array<i64: 128, 32>}, {pipeline_mode = #tpu.pipeline_mode<synchronous>, transform_indices = @transform_2, window_bounds = array<i64: 128, 128>}, {transform_indices = @transform_3, window_bounds = array<i64: 1, 1, 32>}, {transform_indices = @transform_4, window_bounds = array<i64: 1, 1, 32>}, {transform_indices = @transform_5, window_bounds = array<i64: 1, 32, 96>}, {transform_indices = @transform_6, window_bounds = array<i64: 1, 1, 96>}, {transform_indices = @transform_7, window_bounds = array<i64: 1, 32, 32>}, {transform_indices = @transform_8, window_bounds = array<i64: 1, 1, 32>}, {transform_indices = @transform_9, window_bounds = array<i64: 1, 1, 32>}, {transform_indices = @transform_10, window_bounds = array<i64: 1, 1, 32>}, {transform_indices = @transform_11, window_bounds = array<i64: 1, 32, 64>}, {transform_indices = @transform_12, window_bounds = array<i64: 1, 1, 64>}, {transform_indices = @transform_13, window_bounds = array<i64: 1, 64, 32>}, {transform_indices = @transform_14, window_bounds = array<i64: 1, 1, 32>}, {pipeline_mode = #tpu.pipeline_mode<synchronous>, transform_indices = @transform_15, window_bounds = array<i64: 32, 32>}]} {
    %c0_i32 = arith.constant 0 : i32
    %0 = arith.cmpi eq, %arg0, %c0_i32 : i32
    %1 = arith.extui %0 : i1 to i32
    %c0_i32_0 = arith.constant 0 : i32
    %2 = arith.cmpi ne, %1, %c0_i32_0 : i32
    scf.if %2 {
      %c0_71 = arith.constant 0 : index
      %c0_72 = arith.constant 0 : index
      %144 = vector.load %arg1[%c0_71, %c0_72] : memref<32x32xf32, #tpu.memory_space<vmem>>, vector<32x32xf32>
      %c0_73 = arith.constant 0 : index
      %c0_74 = arith.constant 0 : index
      %145 = vector.load %arg16[%c0_73, %c0_74] : memref<32x32xf32, #tpu.memory_space<vmem>>, vector<32x32xf32>
      tpu.vector_store %arg16[%c0_73, %c0_74], %144 {strides = array<i32>} : memref<32x32xf32, #tpu.memory_space<vmem>>, vector<32x32xf32>,
    } else {
    }
    %c0 = arith.constant 0 : index
    %c0_1 = arith.constant 0 : index
    %3 = vector.load %arg16[%c0, %c0_1] : memref<32x32xf32, #tpu.memory_space<vmem>>, vector<32x32xf32>
    %c0_2 = arith.constant 0 : index
    %c0_3 = arith.constant 0 : index
    %4 = vector.load %arg2[%c0_2, %c0_3] : memref<128x32xf32, #tpu.memory_space<vmem>>, vector<128x32xf32>
    %c0_4 = arith.constant 0 : index
    %c0_5 = arith.constant 0 : index
    %5 = vector.load %arg3[%c0_4, %c0_5] : memref<128x128xf32, #tpu.memory_space<vmem>>, vector<128x128xf32>
    %c0_6 = arith.constant 0 : index
    %c0_7 = arith.constant 0 : index
    %c0_8 = arith.constant 0 : index
    %6 = vector.load %arg4[%c0_6, %c0_7, %c0_8] : memref<1x1x32xf32, #tpu.memory_space<vmem>>, vector<1x1x32xf32>
    %7 = vector.shape_cast %6 : vector<1x1x32xf32> to vector<1x32xf32>
    %c0_9 = arith.constant 0 : index
    %c0_10 = arith.constant 0 : index
    %c0_11 = arith.constant 0 : index
    %8 = vector.load %arg5[%c0_9, %c0_10, %c0_11] : memref<1x1x32xf32, #tpu.memory_space<vmem>>, vector<1x1x32xf32>
    %9 = vector.shape_cast %8 : vector<1x1x32xf32> to vector<1x32xf32>
    %cst = arith.constant dense<0.000000e+00> : vector<32xf32>
    %10 = vector.multi_reduction <add>, %3, %cst [1] : vector<32x32xf32> to vector<32xf32>
    %11 = vector.shape_cast %10 : vector<32xf32> to vector<32x1xf32>
    %cst_12 = arith.constant 3.200000e+01 : f32
    %12 = vector.broadcast %cst_12 : f32 to vector<32x1xf32>
    %13 = arith.divf %11, %12 : vector<32x1xf32>
    %14 = vector.broadcast %13 : vector<32x1xf32> to vector<32x32xf32>
    %15 = arith.subf %3, %14 : vector<32x32xf32>
    %16 = arith.mulf %15, %15 : vector<32x32xf32>
    %cst_13 = arith.constant dense<0.000000e+00> : vector<32xf32>
    %17 = vector.multi_reduction <add>, %16, %cst_13 [1] : vector<32x32xf32> to vector<32xf32>
    %18 = vector.shape_cast %17 : vector<32xf32> to vector<32x1xf32>
    %cst_14 = arith.constant 3.200000e+01 : f32
    %19 = vector.broadcast %cst_14 : f32 to vector<32x1xf32>
    %20 = arith.divf %18, %19 : vector<32x1xf32>
    %21 = vector.broadcast %13 : vector<32x1xf32> to vector<32x32xf32>
    %22 = arith.subf %3, %21 : vector<32x32xf32>
    %cst_15 = arith.constant 9.99999974E-6 : f32
    %23 = vector.broadcast %cst_15 : f32 to vector<32x1xf32>
    %24 = arith.addf %20, %23 : vector<32x1xf32>
    %25 = math.rsqrt %24 : vector<32x1xf32>
    %26 = vector.broadcast %25 : vector<32x1xf32> to vector<32x32xf32>
    %27 = arith.mulf %22, %26 : vector<32x32xf32>
    %28 = vector.broadcast %7 : vector<1x32xf32> to vector<32x32xf32>
    %29 = arith.mulf %27, %28 : vector<32x32xf32>
    %30 = vector.broadcast %9 : vector<1x32xf32> to vector<32x32xf32>
    %31 = arith.addf %29, %30 : vector<32x32xf32>
    %c0_16 = arith.constant 0 : index
    %c0_17 = arith.constant 0 : index
    %c0_18 = arith.constant 0 : index
    %32 = vector.load %arg6[%c0_16, %c0_17, %c0_18] : memref<1x32x96xf32, #tpu.memory_space<vmem>>, vector<1x32x96xf32>
    %33 = vector.shape_cast %32 : vector<1x32x96xf32> to vector<32x96xf32>
    %cst_19 = arith.constant dense<0.000000e+00> : vector<32x96xf32>
    %34 = tpu.matmul %31, %33, %cst_19 {dimension_numbers = #tpu.dot_dimension_numbers<[1], [0], [0], [1], [0, 0, 1, 1], [], []>} : vector<32x32xf32>, vector<32x96xf32>, vector<32x96xf32> -> vector<32x96xf32>
    %c0_20 = arith.constant 0 : index
    %c0_21 = arith.constant 0 : index
    %c0_22 = arith.constant 0 : index
    %35 = vector.load %arg7[%c0_20, %c0_21, %c0_22] : memref<1x1x96xf32, #tpu.memory_space<vmem>>, vector<1x1x96xf32>
    %36 = vector.shape_cast %35 : vector<1x1x96xf32> to vector<1x96xf32>
    %37 = vector.broadcast %36 : vector<1x96xf32> to vector<32x96xf32>
    %38 = arith.addf %34, %37 : vector<32x96xf32>
    %39 = vector.extract_strided_slice %38 {offsets = [0, 0], sizes = [32, 32], strides = [1, 1]} : vector<32x96xf32> to vector<32x32xf32>
    %40 = vector.extract_strided_slice %38 {offsets = [0, 32], sizes = [32, 32], strides = [1, 1]} : vector<32x96xf32> to vector<32x32xf32>
    %41 = vector.extract_strided_slice %38 {offsets = [0, 64], sizes = [32, 32], strides = [1, 1]} : vector<32x96xf32> to vector<32x32xf32>
    %42 = vector.extract_strided_slice %39 {offsets = [0, 0], sizes = [16, 32], strides = [1, 1]} : vector<32x32xf32> to vector<16x32xf32>
    %43 = vector.extract_strided_slice %40 {offsets = [0, 0], sizes = [16, 32], strides = [1, 1]} : vector<32x32xf32> to vector<16x32xf32>
    %44 = vector.extract_strided_slice %41 {offsets = [0, 0], sizes = [16, 32], strides = [1, 1]} : vector<32x32xf32> to vector<16x32xf32>
    %45 = tpu.concatenate %43, %43, %43, %43, %43, %43, %43, %43 in 0 : vector<16x32xf32>, vector<16x32xf32>, vector<16x32xf32>, vector<16x32xf32>, vector<16x32xf32>, vector<16x32xf32>, vector<16x32xf32>, vector<16x32xf32> -> vector<128x32xf32>
    %46 = arith.mulf %4, %45 : vector<128x32xf32>
    %47 = tpu.concatenate %44, %44, %44, %44, %44, %44, %44, %44 in 0 : vector<16x32xf32>, vector<16x32xf32>, vector<16x32xf32>, vector<16x32xf32>, vector<16x32xf32>, vector<16x32xf32>, vector<16x32xf32>, vector<16x32xf32> -> vector<128x32xf32>
    %48 = arith.mulf %4, %47 : vector<128x32xf32>
    %cst_23 = arith.constant dense<0.000000e+00> : vector<16x128xf32>
    %49 = tpu.matmul %42, %46, %cst_23 {dimension_numbers = #tpu.dot_dimension_numbers<[1], [1], [0], [0], [0, 0, 1, 0], [], []>} : vector<16x32xf32>, vector<128x32xf32>, vector<16x128xf32> -> vector<16x128xf32>
    %cst_24 = arith.constant 0.176776692 : f32
    %50 = vector.broadcast %cst_24 : f32 to vector<16x128xf32>
    %51 = arith.mulf %49, %50 : vector<16x128xf32>
    %cst_25 = arith.constant dense<0xFF800000> : vector<16xf32>
    %52 = vector.multi_reduction <maximumf>, %51, %cst_25 [1] : vector<16x128xf32> to vector<16xf32>
    %53 = vector.shape_cast %52 : vector<16xf32> to vector<16x1xf32>
    %54 = vector.broadcast %53 : vector<16x1xf32> to vector<16x128xf32>
    %55 = arith.subf %51, %54 : vector<16x128xf32>
    %56 = math.exp %55 : vector<16x128xf32>
    %cst_26 = arith.constant dense<0.000000e+00> : vector<16x128xf32>
    %57 = tpu.matmul %56, %5, %cst_26 {dimension_numbers = #tpu.dot_dimension_numbers<[1], [0], [0], [1], [0, 0, 1, 1], [], []>} : vector<16x128xf32>, vector<128x128xf32>, vector<16x128xf32> -> vector<16x128xf32>
    %58 = tpu.reciprocal %57 {approx = true} : vector<16x128xf32> -> vector<16x128xf32>
    %59 = arith.mulf %56, %58 : vector<16x128xf32>
    %cst_27 = arith.constant dense<0.000000e+00> : vector<16x32xf32>
    %60 = tpu.matmul %59, %48, %cst_27 {dimension_numbers = #tpu.dot_dimension_numbers<[1], [0], [0], [1], [0, 0, 1, 1], [], []>} : vector<16x128xf32>, vector<128x32xf32>, vector<16x32xf32> -> vector<16x32xf32>
    %61 = vector.extract_strided_slice %39 {offsets = [16, 0], sizes = [16, 32], strides = [1, 1]} : vector<32x32xf32> to vector<16x32xf32>
    %62 = vector.extract_strided_slice %40 {offsets = [16, 0], sizes = [16, 32], strides = [1, 1]} : vector<32x32xf32> to vector<16x32xf32>
    %63 = vector.extract_strided_slice %41 {offsets = [16, 0], sizes = [16, 32], strides = [1, 1]} : vector<32x32xf32> to vector<16x32xf32>
    %64 = tpu.concatenate %62, %62, %62, %62, %62, %62, %62, %62 in 0 : vector<16x32xf32>, vector<16x32xf32>, vector<16x32xf32>, vector<16x32xf32>, vector<16x32xf32>, vector<16x32xf32>, vector<16x32xf32>, vector<16x32xf32> -> vector<128x32xf32>
    %65 = arith.mulf %4, %64 : vector<128x32xf32>
    %66 = tpu.concatenate %63, %63, %63, %63, %63, %63, %63, %63 in 0 : vector<16x32xf32>, vector<16x32xf32>, vector<16x32xf32>, vector<16x32xf32>, vector<16x32xf32>, vector<16x32xf32>, vector<16x32xf32>, vector<16x32xf32> -> vector<128x32xf32>
    %67 = arith.mulf %4, %66 : vector<128x32xf32>
    %cst_28 = arith.constant dense<0.000000e+00> : vector<16x128xf32>
    %68 = tpu.matmul %61, %65, %cst_28 {dimension_numbers = #tpu.dot_dimension_numbers<[1], [1], [0], [0], [0, 0, 1, 0], [], []>} : vector<16x32xf32>, vector<128x32xf32>, vector<16x128xf32> -> vector<16x128xf32>
    %cst_29 = arith.constant 0.176776692 : f32
    %69 = vector.broadcast %cst_29 : f32 to vector<16x128xf32>
    %70 = arith.mulf %68, %69 : vector<16x128xf32>
    %cst_30 = arith.constant dense<0xFF800000> : vector<16xf32>
    %71 = vector.multi_reduction <maximumf>, %70, %cst_30 [1] : vector<16x128xf32> to vector<16xf32>
    %72 = vector.shape_cast %71 : vector<16xf32> to vector<16x1xf32>
    %73 = vector.broadcast %72 : vector<16x1xf32> to vector<16x128xf32>
    %74 = arith.subf %70, %73 : vector<16x128xf32>
    %75 = math.exp %74 : vector<16x128xf32>
    %cst_31 = arith.constant dense<0.000000e+00> : vector<16x128xf32>
    %76 = tpu.matmul %75, %5, %cst_31 {dimension_numbers = #tpu.dot_dimension_numbers<[1], [0], [0], [1], [0, 0, 1, 1], [], []>} : vector<16x128xf32>, vector<128x128xf32>, vector<16x128xf32> -> vector<16x128xf32>
    %77 = tpu.reciprocal %76 {approx = true} : vector<16x128xf32> -> vector<16x128xf32>
    %78 = arith.mulf %75, %77 : vector<16x128xf32>
    %cst_32 = arith.constant dense<0.000000e+00> : vector<16x32xf32>
    %79 = tpu.matmul %78, %67, %cst_32 {dimension_numbers = #tpu.dot_dimension_numbers<[1], [0], [0], [1], [0, 0, 1, 1], [], []>} : vector<16x128xf32>, vector<128x32xf32>, vector<16x32xf32> -> vector<16x32xf32>
    %80 = tpu.concatenate %60, %79 in 0 : vector<16x32xf32>, vector<16x32xf32> -> vector<32x32xf32>
    %c0_33 = arith.constant 0 : index
    %c0_34 = arith.constant 0 : index
    %c0_35 = arith.constant 0 : index
    %81 = vector.load %arg8[%c0_33, %c0_34, %c0_35] : memref<1x32x32xf32, #tpu.memory_space<vmem>>, vector<1x32x32xf32>
    %82 = vector.shape_cast %81 : vector<1x32x32xf32> to vector<32x32xf32>
    %cst_36 = arith.constant dense<0.000000e+00> : vector<32x32xf32>
    %83 = tpu.matmul %80, %82, %cst_36 {dimension_numbers = #tpu.dot_dimension_numbers<[1], [0], [0], [1], [0, 0, 1, 1], [], []>} : vector<32x32xf32>, vector<32x32xf32>, vector<32x32xf32> -> vector<32x32xf32>
    %c0_37 = arith.constant 0 : index
    %c0_38 = arith.constant 0 : index
    %c0_39 = arith.constant 0 : index
    %84 = vector.load %arg9[%c0_37, %c0_38, %c0_39] : memref<1x1x32xf32, #tpu.memory_space<vmem>>, vector<1x1x32xf32>
    %85 = vector.shape_cast %84 : vector<1x1x32xf32> to vector<1x32xf32>
    %86 = vector.broadcast %85 : vector<1x32xf32> to vector<32x32xf32>
    %87 = arith.addf %83, %86 : vector<32x32xf32>
    %88 = arith.addf %3, %87 : vector<32x32xf32>
    %c0_40 = arith.constant 0 : index
    %c0_41 = arith.constant 0 : index
    %c0_42 = arith.constant 0 : index
    %89 = vector.load %arg10[%c0_40, %c0_41, %c0_42] : memref<1x1x32xf32, #tpu.memory_space<vmem>>, vector<1x1x32xf32>
    %90 = vector.shape_cast %89 : vector<1x1x32xf32> to vector<1x32xf32>
    %c0_43 = arith.constant 0 : index
    %c0_44 = arith.constant 0 : index
    %c0_45 = arith.constant 0 : index
    %91 = vector.load %arg11[%c0_43, %c0_44, %c0_45] : memref<1x1x32xf32, #tpu.memory_space<vmem>>, vector<1x1x32xf32>
    %92 = vector.shape_cast %91 : vector<1x1x32xf32> to vector<1x32xf32>
    %cst_46 = arith.constant dense<0.000000e+00> : vector<32xf32>
    %93 = vector.multi_reduction <add>, %88, %cst_46 [1] : vector<32x32xf32> to vector<32xf32>
    %94 = vector.shape_cast %93 : vector<32xf32> to vector<32x1xf32>
    %cst_47 = arith.constant 3.200000e+01 : f32
    %95 = vector.broadcast %cst_47 : f32 to vector<32x1xf32>
    %96 = arith.divf %94, %95 : vector<32x1xf32>
    %97 = vector.broadcast %96 : vector<32x1xf32> to vector<32x32xf32>
    %98 = arith.subf %88, %97 : vector<32x32xf32>
    %99 = arith.mulf %98, %98 : vector<32x32xf32>
    %cst_48 = arith.constant dense<0.000000e+00> : vector<32xf32>
    %100 = vector.multi_reduction <add>, %99, %cst_48 [1] : vector<32x32xf32> to vector<32xf32>
    %101 = vector.shape_cast %100 : vector<32xf32> to vector<32x1xf32>
    %cst_49 = arith.constant 3.200000e+01 : f32
    %102 = vector.broadcast %cst_49 : f32 to vector<32x1xf32>
    %103 = arith.divf %101, %102 : vector<32x1xf32>
    %104 = vector.broadcast %96 : vector<32x1xf32> to vector<32x32xf32>
    %105 = arith.subf %88, %104 : vector<32x32xf32>
    %cst_50 = arith.constant 9.99999974E-6 : f32
    %106 = vector.broadcast %cst_50 : f32 to vector<32x1xf32>
    %107 = arith.addf %103, %106 : vector<32x1xf32>
    %108 = math.rsqrt %107 : vector<32x1xf32>
    %109 = vector.broadcast %108 : vector<32x1xf32> to vector<32x32xf32>
    %110 = arith.mulf %105, %109 : vector<32x32xf32>
    %111 = vector.broadcast %90 : vector<1x32xf32> to vector<32x32xf32>
    %112 = arith.mulf %110, %111 : vector<32x32xf32>
    %113 = vector.broadcast %92 : vector<1x32xf32> to vector<32x32xf32>
    %114 = arith.addf %112, %113 : vector<32x32xf32>
    %c0_51 = arith.constant 0 : index
    %c0_52 = arith.constant 0 : index
    %c0_53 = arith.constant 0 : index
    %115 = vector.load %arg12[%c0_51, %c0_52, %c0_53] : memref<1x32x64xf32, #tpu.memory_space<vmem>>, vector<1x32x64xf32>
    %116 = vector.shape_cast %115 : vector<1x32x64xf32> to vector<32x64xf32>
    %cst_54 = arith.constant dense<0.000000e+00> : vector<32x64xf32>
    %117 = tpu.matmul %114, %116, %cst_54 {dimension_numbers = #tpu.dot_dimension_numbers<[1], [0], [0], [1], [0, 0, 1, 1], [], []>} : vector<32x32xf32>, vector<32x64xf32>, vector<32x64xf32> -> vector<32x64xf32>
    %c0_55 = arith.constant 0 : index
    %c0_56 = arith.constant 0 : index
    %c0_57 = arith.constant 0 : index
    %118 = vector.load %arg13[%c0_55, %c0_56, %c0_57] : memref<1x1x64xf32, #tpu.memory_space<vmem>>, vector<1x1x64xf32>
    %119 = vector.shape_cast %118 : vector<1x1x64xf32> to vector<1x64xf32>
    %120 = vector.broadcast %119 : vector<1x64xf32> to vector<32x64xf32>
    %121 = arith.addf %117, %120 : vector<32x64xf32>
    %cst_58 = arith.constant 5.000000e-01 : f32
    %122 = vector.broadcast %cst_58 : f32 to vector<32x64xf32>
    %123 = arith.mulf %122, %121 : vector<32x64xf32>
    %cst_59 = arith.constant 4.471500e-02 : f32
    %124 = vector.broadcast %cst_59 : f32 to vector<32x64xf32>
    %125 = arith.mulf %124, %121 : vector<32x64xf32>
    %126 = arith.mulf %125, %121 : vector<32x64xf32>
    %127 = arith.mulf %126, %121 : vector<32x64xf32>
    %128 = arith.addf %121, %127 : vector<32x64xf32>
    %cst_60 = arith.constant 0.797884583 : f32
    %129 = vector.broadcast %cst_60 : f32 to vector<32x64xf32>
    %130 = arith.mulf %129, %128 : vector<32x64xf32>
    %131 = math.tanh %130 : vector<32x64xf32>
    %cst_61 = arith.constant 1.000000e+00 : f32
    %132 = vector.broadcast %cst_61 : f32 to vector<32x64xf32>
    %133 = arith.addf %132, %131 : vector<32x64xf32>
    %134 = arith.mulf %123, %133 : vector<32x64xf32>
    %c0_62 = arith.constant 0 : index
    %c0_63 = arith.constant 0 : index
    %c0_64 = arith.constant 0 : index
    %135 = vector.load %arg14[%c0_62, %c0_63, %c0_64] : memref<1x64x32xf32, #tpu.memory_space<vmem>>, vector<1x64x32xf32>
    %136 = vector.shape_cast %135 : vector<1x64x32xf32> to vector<64x32xf32>
    %cst_65 = arith.constant dense<0.000000e+00> : vector<32x32xf32>
    %137 = tpu.matmul %134, %136, %cst_65 {dimension_numbers = #tpu.dot_dimension_numbers<[1], [0], [0], [1], [0, 0, 1, 1], [], []>} : vector<32x64xf32>, vector<64x32xf32>, vector<32x32xf32> -> vector<32x32xf32>
    %c0_66 = arith.constant 0 : index
    %c0_67 = arith.constant 0 : index
    %c0_68 = arith.constant 0 : index
    %138 = vector.load %arg15[%c0_66, %c0_67, %c0_68] : memref<1x1x32xf32, #tpu.memory_space<vmem>>, vector<1x1x32xf32>
    %139 = vector.shape_cast %138 : vector<1x1x32xf32> to vector<1x32xf32>
    %140 = vector.broadcast %139 : vector<1x32xf32> to vector<32x32xf32>
    %141 = arith.addf %137, %140 : vector<32x32xf32>
    %142 = arith.addf %88, %141 : vector<32x32xf32>
    %c0_69 = arith.constant 0 : index
    %c0_70 = arith.constant 0 : index
    %143 = vector.load %arg16[%c0_69, %c0_70] : memref<32x32xf32, #tpu.memory_space<vmem>>, vector<32x32xf32>
    tpu.vector_store %arg16[%c0_69, %c0_70], %142 {strides = array<i32>} : memref<32x32xf32, #tpu.memory_space<vmem>>, vector<32x32xf32>,
    return
  }
  func.func @transform_0(%arg0: i32) -> (i32, i32) {
    %c0_i32 = arith.constant 0 : i32
    %c0_i32_0 = arith.constant 0 : i32
    %c0_i32_1 = arith.constant 0 : i32
    return %c0_i32, %c0_i32_0 : i32, i32
  }
  func.func @transform_1(%arg0: i32) -> (i32, i32) {
    %c0_i32 = arith.constant 0 : i32
    %c0_i32_0 = arith.constant 0 : i32
    %c0_i32_1 = arith.constant 0 : i32
    return %c0_i32, %c0_i32_0 : i32, i32
  }
  func.func @transform_2(%arg0: i32) -> (i32, i32) {
    %c0_i32 = arith.constant 0 : i32
    %c0_i32_0 = arith.constant 0 : i32
    %c0_i32_1 = arith.constant 0 : i32
    return %c0_i32, %c0_i32_0 : i32, i32
  }
  func.func @transform_3(%arg0: i32) -> (i32, i32, i32) {
    %c0_i32 = arith.constant 0 : i32
    %c0_i32_0 = arith.constant 0 : i32
    %c0_i32_1 = arith.constant 0 : i32
    return %arg0, %c0_i32, %c0_i32_0 : i32, i32, i32
  }
  func.func @transform_4(%arg0: i32) -> (i32, i32, i32) {
    %c0_i32 = arith.constant 0 : i32
    %c0_i32_0 = arith.constant 0 : i32
    %c0_i32_1 = arith.constant 0 : i32
    return %arg0, %c0_i32, %c0_i32_0 : i32, i32, i32
  }
  func.func @transform_5(%arg0: i32) -> (i32, i32, i32) {
    %c0_i32 = arith.constant 0 : i32
    %c0_i32_0 = arith.constant 0 : i32
    %c0_i32_1 = arith.constant 0 : i32
    return %arg0, %c0_i32, %c0_i32_0 : i32, i32, i32
  }
  func.func @transform_6(%arg0: i32) -> (i32, i32, i32) {
    %c0_i32 = arith.constant 0 : i32
    %c0_i32_0 = arith.constant 0 : i32
    %c0_i32_1 = arith.constant 0 : i32
    return %arg0, %c0_i32, %c0_i32_0 : i32, i32, i32
  }
  func.func @transform_7(%arg0: i32) -> (i32, i32, i32) {
    %c0_i32 = arith.constant 0 : i32
    %c0_i32_0 = arith.constant 0 : i32
    %c0_i32_1 = arith.constant 0 : i32
    return %arg0, %c0_i32, %c0_i32_0 : i32, i32, i32
  }
  func.func @transform_8(%arg0: i32) -> (i32, i32, i32) {
    %c0_i32 = arith.constant 0 : i32
    %c0_i32_0 = arith.constant 0 : i32
    %c0_i32_1 = arith.constant 0 : i32
    return %arg0, %c0_i32, %c0_i32_0 : i32, i32, i32
  }
  func.func @transform_9(%arg0: i32) -> (i32, i32, i32) {
    %c0_i32 = arith.constant 0 : i32
    %c0_i32_0 = arith.constant 0 : i32
    %c0_i32_1 = arith.constant 0 : i32
    return %arg0, %c0_i32, %c0_i32_0 : i32, i32, i32
  }
  func.func @transform_10(%arg0: i32) -> (i32, i32, i32) {
    %c0_i32 = arith.constant 0 : i32
    %c0_i32_0 = arith.constant 0 : i32
    %c0_i32_1 = arith.constant 0 : i32
    return %arg0, %c0_i32, %c0_i32_0 : i32, i32, i32
  }
  func.func @transform_11(%arg0: i32) -> (i32, i32, i32) {
    %c0_i32 = arith.constant 0 : i32
    %c0_i32_0 = arith.constant 0 : i32
    %c0_i32_1 = arith.constant 0 : i32
    return %arg0, %c0_i32, %c0_i32_0 : i32, i32, i32
  }
  func.func @transform_12(%arg0: i32) -> (i32, i32, i32) {
    %c0_i32 = arith.constant 0 : i32
    %c0_i32_0 = arith.constant 0 : i32
    %c0_i32_1 = arith.constant 0 : i32
    return %arg0, %c0_i32, %c0_i32_0 : i32, i32, i32
  }
  func.func @transform_13(%arg0: i32) -> (i32, i32, i32) {
    %c0_i32 = arith.constant 0 : i32
    %c0_i32_0 = arith.constant 0 : i32
    %c0_i32_1 = arith.constant 0 : i32
    return %arg0, %c0_i32, %c0_i32_0 : i32, i32, i32
  }
  func.func @transform_14(%arg0: i32) -> (i32, i32, i32) {
    %c0_i32 = arith.constant 0 : i32
    %c0_i32_0 = arith.constant 0 : i32
    %c0_i32_1 = arith.constant 0 : i32
    return %arg0, %c0_i32, %c0_i32_0 : i32, i32, i32
  }
  func.func @transform_15(%arg0: i32) -> (i32, i32) {
    %c0_i32 = arith.constant 0 : i32
    %c0_i32_0 = arith.constant 0 : i32
    %c0_i32_1 = arith.constant 0 : i32
    return %c0_i32, %c0_i32_0 : i32, i32
  }
}

</mosaic_0001>

<bundles_post_ra>
// kernel: tpu_custom_call.1
= control target key start
LH: loop header
LB: loop body
LE: loop exit
PB: predicated region body
PF: predicated region fallthrough
CT: control target
= control target key end

     0   :  { %s3735_s0 = inlined_call_operand.vmem [shape: f32[32,32], index: 0, kind: input, shape index: {}]   ;;  %s3736_s1 = inlined_call_operand.vmem [shape: f32[128,32], index: 1, kind: input, shape index: {}]   ;;  %s3737_s2 = inlined_call_operand.vmem [shape: f32[128,128], index: 2, kind: input, shape index: {}]   ;;  %s3738_s3 = inlined_call_operand.vmem [shape: f32[2,1,32], index: 3, kind: input, shape index: {}]   ;;  %s3739_s4 = inlined_call_operand.vmem [shape: f32[2,1,32], index: 4, kind: input, shape index: {}]   ;;  %s3740_s5 = inlined_call_operand.vmem [shape: f32[2,32,96], index: 5, kind: input, shape index: {}]   ;;  %s3741_s6 = inlined_call_operand.vmem [shape: f32[2,1,96], index: 6, kind: input, shape index: {}]   ;;  %s3742_s7 = inlined_call_operand.vmem [shape: f32[2,32,32], index: 7, kind: input, shape index: {}]   ;;  %s3743_s8 = inlined_call_operand.vmem [shape: f32[2,1,32], index: 8, kind: input, shape index: {}]   ;;  %s3744_s9 = inlined_call_operand.vmem [shape: f32[2,1,32], index: 9, kind: input, shape index: {}]   ;;  %s3745_s10 = inlined_call_operand.vmem [shape: f32[2,1,32], index: 10, kind: input, shape index: {}]   ;;  %s3746_s11 = inlined_call_operand.hbm [shape: f32[2,32,64], index: 11, kind: input, shape index: {}]   ;;  %s3747_s12 = inlined_call_operand.vmem [shape: f32[2,1,64], index: 12, kind: input, shape index: {}]   ;;  %s3748_s13 = inlined_call_operand.vmem [shape: f32[2,64,32], index: 13, kind: input, shape index: {}]   ;;  %s3749_s14 = inlined_call_operand.vmem [shape: f32[2,1,32], index: 14, kind: input, shape index: {}]   ;;  %s3750_s15 = inlined_call_operand.hbm [shape: f32[32,32], index: 15, kind: output, shape index: {}]  }
   0x1   :  { %3759 = sst [smem:[#allocation13_spill]] %s3736_s1 }
   0x2   :  { %3760 = sst [smem:[#allocation14_spill]] %s3737_s2 }
   0x3   :  { %3761 = sst [smem:[#allocation15_spill]] %s3740_s5 }
   0x4   :  { %3762 = sst [smem:[#allocation16_spill]] %s3742_s7 }
   0x5   :  { %3763 = sst [smem:[#allocation17_spill]] %s3746_s11 }
   0x6   :  { %3764 = sst [smem:[#allocation18_spill]] %s3750_s15 }
   0x7   :  { %20 = vsyncpa [#allocation3], 0 }
   0x8   :  { %22 = vsyncpa [#allocation3 + $0x1], 0 }
   0x9   :  { %23 = vsyncpa [#allocation4], 0  ;;  %s2975_s18 = smov 0   ;;  %s2977_s19 = smov 0  }
   0xa   :  { %s2979_s20 = smov 0   ;;  %s2981_s21 = smov 0  }
   0xb LB: > { %3765 = sst [smem:[#allocation8_spill]] %s2877_s19  ;;  %s2994_s22 = sadd.s32 4294967295, %s2885_s21   ;;  %s2885_s21 = sphi %s2981_s21, %s3784_s21   ;;  %s2881_s20 = sphi %s2979_s20, %s3787_s20   ;;  %s2877_s19 = sphi %s2977_s19, %s3786_s19   ;;  %s2873_s18 = sphi %s2975_s18, %s3785_s18  }
   0xc   : > { %3766 = sst [smem:[#allocation9_spill]] %s2881_s20  ;;  %s2997_s23 = sadd.s32 1, %s2885_s21  }
   0xd   : > { %3767 = sst [smem:[#allocation10_spill]] %s2997_s23  ;;  %s304_s24 = ssub.s32 %s2885_s21, %s2997_s23 }
   0xe   : > { %s307_s25 = sadd.s32 1, %s2881_s20  ;;  %p305_p0 = scmp.eq.s32.totalorder %s304_s24, 0 }
   0xf   : > { %p314_p1 = scmp.ne.s32.totalorder %s2881_s20, %s2877_s19  ;;  %p315_p2 = scmp.eq.s32.totalorder %s2885_s21, 0 }
  0x10   : > { %p320_p3 = scmp.ne.s32.totalorder %s2877_s19, %s2873_s18  ;;  %p321_p5 = scmp.eq.s32.totalorder %s2994_s22, 0 }
  0x11   : > { %s3007_s26 = scalar_select %p305_p0, %s2881_s20, %s307_s25  }
  0x12   : > { %p316_p4 = por %p315_p2, %p314_p1  ;;  %p2713_p6 = scmp.lt.s32.totalorder %s2885_s21, 2 }
  0x13   : > { %3768 = sst [smem:[#allocation11_spill]] %s3007_s26  ;;  %p3011_p7 = por %p321_p5, %p320_p3 }
  0x14   : > { %s504_s28 = sand.u32 1, %s2881_s20   ;;  %s2281_s30 = sshll.u32 %s2885_s21, 9 }
  0x15   : > { %s3769_s27 = scalar_select %p3011_p7, 1, 0 }
  0x16   : > { %s2205_s29 = sshll.u32 %s504_s28, 5  ;;  %s3770_s11 = sld [smem:[#allocation17_spill]] }
  0x17   : > { %s508_s18 = scalar_lea.vmem [#allocation2], %s2205_s29  ;;  %p3024_p8 = pnand %p2713_p6, %p316_p4 }
  0x18   : > { %s515_s25 = sshll.u32 %s508_s18, 4  ;;  %s3029_s20 = scalar_lea.sflag [#allocation3], %s504_s28  ;;  %s3022_s25 = int_to_ptr.vmem [resolvable:$true] %s515_s25 }
  0x19   : > { %p2797_p11 = pneg %p3024_p8 }
  0x1c   : > { %s3020_s24 = scalar_lea.hbm %s3770_s11, %s2281_s30  ;;  %s2800_s29 = scalar_lea.hbm %s3770_s11, 1024 }
  0x1d   : > { %s2795_s23 = scalar_lea.hbm %s3020_s24, 512  ;;  %p2801_p0 = scmp.lt.s32.totalorder %s3020_s24, %s3770_s11 }
  0x1e   : > { %p2796_p10 = scmp.ne.s32.totalorder %s3020_s24, %s2795_s23  ;;  %p2802_p1 = scmp.lt.s32.totalorder %s2800_s29, %s2795_s23 }
  0x20   : > { %p2798_p12 = pnand %p2797_p11, %p2796_p10  ;;  %p2803_p2 = por %p2802_p1, %p2801_p0 }
  0x22   : > { %p2799_p13 = pneg %p2798_p12 }
  0x24   : > { %p2804_p3 = pnand %p2803_p2, %p2799_p13 }
  0x26   : > { %2807 = shalt.err (!%p2804_p3)
}
  0x27   : > { %s2808_s28 = scalar_lea.vmem %s3022_s25, 512  ;;  %s2887_s15 = smov [#allocation2]  }
  0x28   : > { %p2809_p4 = scmp.ne.s32.totalorder %s3022_s25, %s2808_s28  ;;  %s2813_s2 = sshll.u32 %s2887_s15, 4  ;;  %s2814_s2 = int_to_ptr.vmem [resolvable:$false] %s2813_s2 }
  0x29   : > { %s2815_s30 = scalar_lea.vmem %s2814_s2, 1024  ;;  %p2816_p10 = scmp.lt.s32.totalorder %s3022_s25, %s2814_s2 }
  0x2a   : > { %p2811_p5 = pnand %p2809_p4, %p2797_p11  ;;  %p2817_p12 = scmp.lt.s32.totalorder %s2815_s30, %s2808_s28 }
  0x2c   : > { %p2812_p6 = pneg %p2811_p5  ;;  %p2818_p9 = por %p2817_p12, %p2816_p10 }
  0x2e   : > { %p2819_p7 = pnand %p2818_p9, %p2812_p6 }
  0x30   : > { %2822 = shalt.err (!%p2819_p7)
}
  0x31   : > { %s2888_s23 = smov 128   ;;  %s2889_s16 = smov 8  }
  0x32   : > { %2712 = dma.hbm_to_vmem [thread:$0]  (!%p3024_p8), %s3020_s24, 512, %s3022_s25, %s3029_s20, %s2888_s23, %s2888_s23, %s2889_s16  }
  0x33   : > { %p543_p11 = scmp.lt.s32.totalorder %s2885_s21, 3  ;;  %p3772_p13 = scmp.ge.s32.totalorder %s2885_s21, 1 }
  0x35   : > { %p544_p0 = pnand %p3772_p13, %p543_p11 }
  0x37   : > { %547 = sbr.rel (%p544_p0) target bundleno = 2730 (0xaaa), region = 80 }
  0x3c   : > { %s549_s2 = sand.u32 1, %s2877_s19   ;;  %p3774_p7 = scmp.ne.s32.totalorder %s3769_s27, 0 }
  0x3d   : > { %s2209_s15 = sshll.u32 %s549_s2, 5  ;;  %s550_s29 = scalar_lea.sflag [#allocation3], %s549_s2 }
  0x3e   : > { %s3054_s17 = scalar_lea.vmem [#allocation2], %s2209_s15 }
  0x3f   : > { %3773 = sst [smem:[#allocation12_spill]] %s3054_s17 }
  0x40   : > { %2864 = dma.done.wait (%p3774_p7), %s550_s29, 512  }
  0x41   : > { %2866 = vsyncadd (%p3774_p7), %s550_s29, 4294966784  ;;  %p634_p9 = scmp.lt.s32.totalorder %s2994_s22, 1  ;;  %s3775_s5 = sld [smem:[#allocation15_spill]] }
  0x42   : > { %s3776_s7 = sld [smem:[#allocation16_spill]]  ;;  %p2216_p8 = scmp.ne.s32.totalorder %s2994_s22, 0 }
  0x43   : > { %s3062_s20 = scalar_select %p634_p9, %s2994_s22, 1 }
  0x45   : > { %s2282_s28 = sshll.u32 %s3062_s20, 5  ;;  %s655_s24 = scalar_lea.vmem %s3743_s8, %s3062_s20 }
  0x46   : > { %s658_s17 = scalar_lea.vmem %s3744_s9, %s3062_s20  ;;  %s661_s16 = scalar_lea.vmem %s3745_s10, %s3062_s20 }
  0x47   : > { %s3080_s29 = scalar_lea.vmem %s3775_s5, %s2282_s28  ;;  %s664_s5 = scalar_lea.vmem %s3747_s12, %s3062_s20 }
  0x48   : > { %s3085_s11 = scalar_lea.vmem %s3776_s7, %s2282_s28  ;;  %s2284_s1 = sshll.u32 %s3062_s20, 6 }
  0x49   : > { %s672_s26 = scalar_lea.vmem %s3749_s14, %s3062_s20  ;;  %s3111_s27 = scalar_lea.vmem %s3748_s13, %s2284_s1 }
  0x4a   : > { %676 = sbr.rel (%p2216_p8) target bundleno = 82 (0x52), region = 88 }
  0x4f   : > { %v677_v0 = vld [vmem:[%s3735_s0] sm:$0xff]  ;;  %vm681_vm0 = vcmask 261120   ;;  %v678_v1 = vld [vmem:[%s3735_s0 + $0x8] sm:$0xff]  ;;  %v679_v2 = vld [vmem:[%s3735_s0 + $0x10] sm:$0xff] }
  0x50   : > { %682 = vst.msk [vmem:[#allocation5] sm:$0xff] %vm681_vm0, %v677_v0  ;;  %683 = vst.msk [vmem:[#allocation5 + $0x8] sm:$0xff] %vm681_vm0, %v678_v1  ;;  %v680_v3 = vld [vmem:[%s3735_s0 + $0x18] sm:$0xff] }
  0x51   : > { %684 = vst.msk [vmem:[#allocation5 + $0x10] sm:$0xff] %vm681_vm0, %v679_v2  ;;  %685 = vst.msk [vmem:[#allocation5 + $0x18] sm:$0xff] %vm681_vm0, %v680_v3 }
  0x52 PF: > { %vm724_vm1 = vcmask 261120   ;;  %v801_v27 = vld [vmem:[%s3080_s29 + $0x18] sm:$0xff]  ;;  %v800_v28 = vld [vmem:[%s3080_s29 + $0x10] sm:$0xff]  ;;  %v799_v29 = vld [vmem:[%s3080_s29 + $0x8] sm:$0xff]  ;;  %s3777_s28 = scalar_lea.vmem %s3738_s3, %s3062_s20  ;;  %s3778_s25 = scalar_lea.vmem %s3739_s4, %s3062_s20  ;;  %vm1929_vm2 = vcmask 523264  }
  0x53   : > { %2429 = vmatprep.subr.mxu0 %v801_v27  ;;  %v798_v30 = vld [vmem:[%s3080_s29] sm:$0xff]  ;;  %s3779_s2 = scalar_lea.vmem %s3741_s6, %s3062_s20  ;;  %s2890_s15 = smov 96  }
  0x54   : > { %2430 = vmatpush3.msra.mxu0 %v801_v27  ;;  %v2217_v46 = vld [vmem:[%s3777_s28] ss:$0 sm:$0xff]  ;;  %s3780_s29 = sld [smem:[#allocation13_spill]]  ;;  %s2891_s19 = smov 64  }
  0x55   : > { %2431 = vmatprep.subr.mxu0 %v800_v28  ;;  %v2218_v48 = vld [vmem:[%s3778_s25] ss:$0 sm:$0xff]  ;;  %s3781_s28 = sld [smem:[#allocation14_spill]]  ;;  %p2714_p1 = scmp.eq.s32.totalorder %s2994_s22, 1 }
  0x56   : > { %2432 = vmatpush3.msra.mxu0 %v800_v28  ;;  %v2219_v2 = vld [vmem:[%s3779_s2] ss:$0 sm:$0xff]  ;;  %s2892_s2 = smov [#allocation5]  }
  0x57   : > { %v3126_v4 = vld [vmem:[#allocation5] sm:$0xff]  ;;  %v3128_v5 = vld [vmem:[#allocation5 + $0x8] sm:$0xff]  ;;  %2433 = vmatprep.subr.mxu0 %v799_v29  ;;  %s2041_s20 = sshll.u32 %s2892_s2, 4  ;;  %s2042_s20 = int_to_ptr.vmem [resolvable:$true] %s2041_s20 }
  0x58   : > { %v725_v6 = vsel %vm724_vm1, %v3126_v4, 0.0  ;;  %v728_v7 = vsel %vm724_vm1, %v3128_v5, 0.0  ;;  %v3134_v8 = vld [vmem:[#allocation5 + $0x10] sm:$0xff]  ;;  %v3141_v21 = vld [vmem:[#allocation5 + $0x18] sm:$0xff]  ;;  %2434 = vmatpush3.msra.mxu0 %v799_v29  ;;  %p2830_p5 = scmp.lt.s32.totalorder %s2042_s20, %s2042_s20 }
  0x59   : > { %726 = vadd.xlane.f32.xlu0 %v725_v6  ;;  %v731_v9 = vsel %vm724_vm1, %v3134_v8, 0.0  ;;  %v734_v24 = vsel %vm724_vm1, %v3141_v21, 0.0  ;;  %2435 = vmatprep.subr.mxu0 %v798_v30 }
  0x5a   : > { %2436 = vmatpush3.msra.mxu0 %v798_v30  ;;  %v3251_v27 = vld [vmem:[%s3780_s29 + $0x40] sm:$0xff]  ;;  %v3260_v29 = vld [vmem:[%s3780_s29 + $0x38] sm:$0xff] }
  0x5d   : > { %729 = vadd.xlane.f32.xlu0 %v728_v7 }
  0x61   : > { %732 = vadd.xlane.f32.xlu0 %v731_v9 }
  0xe2   : > { %v727_v10 = vpop.xlane.xlu0 %726 }
  0xe3   : > { %v738_v11 = vmul.f32 0.03125, %v727_v10  ;;  %v3186_v10 = vld [vmem:[%s3780_s29 + $0x78] sm:$0xff] }
  0xe5   : > { %v742_v12 = vsub.f32 %v3126_v4, %v738_v11 }
  0xe6   : > { %v730_v13 = vpop.xlane.xlu0 %729 }
  0xe7   : > { %v739_v14 = vmul.f32 0.03125, %v730_v13  ;;  %v746_v15 = vmul.f32 %v742_v12, %v742_v12 }
  0xe9   : > { %v743_v16 = vsub.f32 %v3128_v5, %v739_v14  ;;  %v750_v17 = vsel %vm724_vm1, %v746_v15, 0.0 }
  0xea   : > { %751 = vadd.xlane.f32.xlu1 %v750_v17  ;;  %v733_v18 = vpop.xlane.xlu0 %732 }
  0xeb   : > { %v747_v19 = vmul.f32 %v743_v16, %v743_v16  ;;  %v740_v20 = vmul.f32 0.03125, %v733_v18  ;;  %v3215_v18 = vld [vmem:[%s3780_s29 + $0x60] sm:$0xff] }
  0xed   : > { %v753_v22 = vsel %vm724_vm1, %v747_v19, 0.0  ;;  %v744_v23 = vsub.f32 %v3134_v8, %v740_v20  ;;  %v3224_v20 = vld [vmem:[%s3780_s29 + $0x58] sm:$0xff] }
  0xee   : > { %754 = vadd.xlane.f32.xlu1 %v753_v22 }
  0xef   : > { %v748_v25 = vmul.f32 %v744_v23, %v744_v23 }
  0xf1   : > { %v756_v26 = vsel %vm724_vm1, %v748_v25, 0.0  ;;  %v3242_v25 = vld [vmem:[%s3780_s29 + $0x48] sm:$0xff] }
  0xf2   : > { %735 = vadd.xlane.f32.xlu1 %v734_v24  ;;  %757 = vadd.xlane.f32.xlu0 %v756_v26 }
 0x173   : > { %v752_v31 = vpop.xlane.xlu1 %751 }
 0x174   : > { %v762_v32 = vmul.f32 0.03125, %v752_v31 }
 0x176   : > { %v766_v33 = vadd.f32 1e-05, %v762_v32  ;;  %v3269_v32 = vld [vmem:[%s3780_s29 + $0x30] sm:$0xff] }
 0x177   : > { %v755_v34 = vpop.xlane.xlu1 %754 }
 0x178   : > { %2755 = vrsqrt.f32 %v766_v33  ;;  %v763_v35 = vmul.f32 0.03125, %v755_v34 }
 0x17a   : > { %v767_v36 = vadd.f32 1e-05, %v763_v35 }
 0x17b   : > { %v736_v37 = vpop.xlane.xlu1 %735  ;;  %v758_v38 = vpop.xlane.xlu0 %757 }
 0x17c   : > { %2757 = vrsqrt.f32 %v767_v36  ;;  %v741_v39 = vmul.f32 0.03125, %v736_v37  ;;  %v764_v40 = vmul.f32 0.03125, %v758_v38  ;;  %v3282_v36 = vld [vmem:[%s3780_s29 + $0x28] sm:$0xff] }
 0x17e   : > { %v745_v41 = vsub.f32 %v3141_v21, %v741_v39  ;;  %v768_v42 = vadd.f32 1e-05, %v764_v40  ;;  %v3295_v39 = vld [vmem:[%s3780_s29 + $0x20] sm:$0xff] }
 0x180   : > { %v749_v43 = vmul.f32 %v745_v41, %v745_v41  ;;  %2759 = vrsqrt.f32 %v768_v42 }
 0x182   : > { %v759_v44 = vsel %vm724_vm1, %v749_v43, 0.0  ;;  %v3313_v43 = vld [vmem:[%s3780_s29 + $0x10] sm:$0xff] }
 0x183   : > { %760 = vadd.xlane.f32.xlu1 %v759_v44 }
 0x185   : > { %v2756_v45 = vpop.eup %2755 }
 0x186   : > { %v774_v47 = vmul.f32 %v2756_v45, %v742_v12  ;;  %v3193_v12 = vld [vmem:[%s3780_s29 + $0x70] sm:$0xff]  ;;  %v3322_v45 = vld [vmem:[%s3780_s29 + $0x8] sm:$0xff] }
 0x188   : > { %v784_v49 = vmul.f32 %v2217_v46, %v774_v47  ;;  %v3331_v47 = vld [vmem:[%s3780_s29] sm:$0xff] }
 0x189   : > { %v2758_v50 = vpop.eup %2757 }
 0x18a   : > { %v794_v51 = vadd.f32 %v2218_v48, %v784_v49  ;;  %v775_v52 = vmul.f32 %v2758_v50, %v743_v16  ;;  %v3206_v16 = vld [vmem:[%s3780_s29 + $0x68] sm:$0xff] }
 0x18c   : > { %2437 = vmatprep.mubr.msk.f32.mxu0 %vm724_vm1, %v794_v51  ;;  %v785_v53 = vmul.f32 %v2217_v46, %v775_v52 }
 0x18d   : > { %v2760_v54 = vpop.eup %2759 }
 0x18e   : > { %v795_v55 = vadd.f32 %v2218_v48, %v785_v53  ;;  %v776_v56 = vmul.f32 %v2760_v54, %v744_v23  ;;  %v3233_v23 = vld [vmem:[%s3780_s29 + $0x50] sm:$0xff]  ;;  %v3361_v54 = vld [vmem:[%s3781_s28 + $0x78] sm:$0xff] }
 0x18f   : > { %2478 = vmatprep.subr.mxu0 %v3361_v54 }
 0x190   : > { %2438 = vmatmul.mubr.msk.f32.vlgmr.msra.gmra.mxu0 %vm724_vm1, %v795_v55  ;;  %v786_v57 = vmul.f32 %v2217_v46, %v776_v56  ;;  %v3366_v55 = vld [vmem:[%s3781_s28 + $0x70] sm:$0xff] }
 0x191   : > { %2479 = vmatpush3.msra.mxu0 %v3361_v54 }
 0x192   : > { %v796_v58 = vadd.f32 %v2218_v48, %v786_v57  ;;  %v3375_v57 = vld [vmem:[%s3781_s28 + $0x68] sm:$0xff]  ;;  %2480 = vmatprep.subr.mxu0 %v3366_v55 }
 0x193   : > { %2481 = vmatpush3.msra.mxu0 %v3366_v55 }
 0x194   : > { %2440 = vmatprep.mubr.msk.f32.mxu0 %vm724_vm1, %v796_v58  ;;  %v3384_v58 = vld [vmem:[%s3781_s28 + $0x60] sm:$0xff]  ;;  %2482 = vmatprep.subr.mxu0 %v3375_v57 }
 0x195   : > { %2483 = vmatpush3.msra.mxu0 %v3375_v57 }
 0x196   : > { %2484 = vmatprep.subr.mxu0 %v3384_v58 }
 0x197   : > { %2485 = vmatpush3.msra.mxu0 %v3384_v58 }
 0x20c   : > { %v761_v59 = vpop.xlane.xlu1 %760 }
 0x20d   : > { %v765_v60 = vmul.f32 0.03125, %v761_v59 }
 0x20f   : > { %v769_v61 = vadd.f32 1e-05, %v765_v60  ;;  %v3393_v60 = vld [vmem:[%s3781_s28 + $0x58] sm:$0xff] }
 0x210   : > { %2486 = vmatprep.subr.mxu0 %v3393_v60 }
 0x211   : > { %2761 = vrsqrt.f32 %v769_v61  ;;  %v3402_v61 = vld [vmem:[%s3781_s28 + $0x50] sm:$0xff]  ;;  %2487 = vmatpush3.msra.mxu0 %v3393_v60 }
 0x212   : > { %2488 = vmatprep.subr.mxu0 %v3402_v61 }
 0x213   : > { %2489 = vmatpush3.msra.mxu0 %v3402_v61 }
 0x21e   : > { %v2762_v62 = vpop.eup %2761 }
 0x21f   : > { %v777_v63 = vmul.f32 %v2762_v62, %v745_v41  ;;  %v3304_v41 = vld [vmem:[%s3780_s29 + $0x18] sm:$0xff] }
 0x221   : > { %v787_v0 = vmul.f32 %v2217_v46, %v777_v63  ;;  %v3411_v63 = vld [vmem:[%s3781_s28 + $0x48] sm:$0xff] }
 0x222   : > { %2490 = vmatprep.subr.mxu0 %v3411_v63 }
 0x223   : > { %v797_v1 = vadd.f32 %v2218_v48, %v787_v0  ;;  %v3420_v0 = vld [vmem:[%s3781_s28 + $0x40] sm:$0xff]  ;;  %2491 = vmatpush3.msra.mxu0 %v3411_v63 }
 0x224   : > { %2492 = vmatprep.subr.mxu0 %v3420_v0 }
 0x225   : > { %2441 = vmatmul.mubr.msk.f32.gmra.mxu0 %vm724_vm1, %v797_v1 }
 0x226   : > { %2493 = vmatpush3.msra.mxu0 %v3420_v0 }
 0x250   : > { %v2439_v3 = vpop.f32.mrf.mxu0 }
 0x251   : > { %v3173_v6 = vadd.f32 %v2439_v3, %v2219_v2  ;;  %v3438_v3 = vld [vmem:[%s3781_s28 + $0x30] sm:$0xff] }
 0x252   : > { %v887_v7 = vpop.f32.mrf.mxu0 }
 0x253   : > { %v3175_v9 = vadd.f32 %v2219_v2, %v887_v7  ;;  %910 = vrot.lane.b32.xlu0 %v3173_v6, %s2890_s15 }
 0x255   : > { %2475 = vmatprep.mubr.msk.f32.mxu1 %vm724_vm1, %v3175_v9  ;;  %908 = vrot.lane.b32.xlu1 %v3175_v9, %s2890_s15 }
 0x2c5   : > { %v3188_v11 = vpop.permute.xlu0 %910 }
 0x2c6   : > { %v929_v13 = vmul.f32 %v3188_v11, %v3186_v10  ;;  %v927_v17 = vmul.f32 %v3188_v11, %v3206_v16  ;;  %v925_v22 = vmul.f32 %v3188_v11, %v3224_v20  ;;  %v923_v26 = vmul.f32 %v3188_v11, %v3242_v25 }
 0x2c7   : > { %v3197_v14 = vpop.permute.xlu1 %908  ;;  %v921_v30 = vmul.f32 %v3188_v11, %v3260_v29  ;;  %v919_v38 = vmul.f32 %v3188_v11, %v3282_v36  ;;  %v917_v42 = vmul.f32 %v3188_v11, %v3304_v41  ;;  %v915_v46 = vmul.f32 %v3188_v11, %v3322_v45  ;;  %v3447_v11 = vld [vmem:[%s3781_s28 + $0x28] sm:$0xff] }
 0x2c8   : > { %2443 = vmatprep.subr.msk.mxu1 %vm724_vm1, %v929_v13  ;;  %v928_v15 = vmul.f32 %v3197_v14, %v3193_v12  ;;  %v926_v19 = vmul.f32 %v3197_v14, %v3215_v18  ;;  %v924_v24 = vmul.f32 %v3197_v14, %v3233_v23  ;;  %v922_v28 = vmul.f32 %v3197_v14, %v3251_v27 }
 0x2c9   : > { %2444 = vmatpush3.xpose.msk.msra.mxu1 %vm724_vm1, %v929_v13  ;;  %v920_v35 = vmul.f32 %v3197_v14, %v3269_v32  ;;  %v918_v40 = vmul.f32 %v3197_v14, %v3295_v39  ;;  %v916_v44 = vmul.f32 %v3197_v14, %v3313_v43  ;;  %v914_v48 = vmul.f32 %v3197_v14, %v3331_v47  ;;  %v3456_v13 = vld [vmem:[%s3781_s28 + $0x20] sm:$0xff] }
 0x2ca   : > { %2445 = vmatprep.subr.msk.mxu1 %vm724_vm1, %v928_v15 }
 0x2cd   : > { %2446 = vmatpush3.xpose.msk.msra.mxu1 %vm724_vm1, %v928_v15 }
 0x2ce   : > { %2447 = vmatprep.subr.msk.mxu1 %vm724_vm1, %v927_v17 }
 0x2d1   : > { %2448 = vmatpush3.xpose.msk.msra.mxu1 %vm724_vm1, %v927_v17 }
 0x2d2   : > { %2449 = vmatprep.subr.msk.mxu1 %vm724_vm1, %v926_v19 }
 0x2d5   : > { %2450 = vmatpush3.xpose.msk.msra.mxu1 %vm724_vm1, %v926_v19 }
 0x2d6   : > { %2451 = vmatprep.subr.msk.mxu1 %vm724_vm1, %v925_v22 }
 0x2d9   : > { %2452 = vmatpush3.xpose.msk.msra.mxu1 %vm724_vm1, %v925_v22 }
 0x2da   : > { %2453 = vmatprep.subr.msk.mxu1 %vm724_vm1, %v924_v24 }
 0x2dd   : > { %2454 = vmatpush3.xpose.msk.msra.mxu1 %vm724_vm1, %v924_v24 }
 0x2de   : > { %2455 = vmatprep.subr.msk.mxu1 %vm724_vm1, %v923_v26 }
 0x2e1   : > { %2456 = vmatpush3.xpose.msk.msra.mxu1 %vm724_vm1, %v923_v26 }
 0x2e2   : > { %2457 = vmatprep.subr.msk.mxu1 %vm724_vm1, %v922_v28 }
 0x2e5   : > { %v2442_v31 = vpop.f32.mrf.mxu0  ;;  %2458 = vmatpush3.xpose.msk.msra.mxu1 %vm724_vm1, %v922_v28 }
 0x2e6   : > { %v3271_v33 = vadd.f32 %v2442_v31, %v2219_v2  ;;  %2459 = vmatprep.subr.msk.mxu1 %vm724_vm1, %v921_v30 }
 0x2e7   : > { %v897_v34 = vpop.f32.mrf.mxu0 }
 0x2e8   : > { %1249 = vrot.lane.b32.xlu1 %v3271_v33, %s2890_s15  ;;  %v3284_v37 = vadd.f32 %v2219_v2, %v897_v34  ;;  %v3429_v2 = vld [vmem:[%s3781_s28 + $0x38] sm:$0xff] }
 0x2e9   : > { %2460 = vmatpush3.xpose.msk.msra.mxu1 %vm724_vm1, %v921_v30  ;;  %2494 = vmatprep.subr.mxu0 %v3429_v2 }
 0x2ea   : > { %2461 = vmatprep.subr.msk.mxu1 %vm724_vm1, %v920_v35  ;;  %2495 = vmatpush3.msra.mxu0 %v3429_v2 }
 0x2eb   : > { %2496 = vmatprep.subr.mxu0 %v3438_v3 }
 0x2ec   : > { %1247 = vrot.lane.b32.xlu1 %v3284_v37, %s2890_s15  ;;  %2497 = vmatpush3.msra.mxu0 %v3438_v3 }
 0x2ed   : > { %2462 = vmatpush3.xpose.msk.msra.mxu1 %vm724_vm1, %v920_v35  ;;  %2498 = vmatprep.subr.mxu0 %v3447_v11 }
 0x2ee   : > { %2463 = vmatprep.subr.msk.mxu1 %vm724_vm1, %v919_v38  ;;  %2499 = vmatpush3.msra.mxu0 %v3447_v11 }
 0x2ef   : > { %2500 = vmatprep.subr.mxu0 %v3456_v13 }
 0x2f0   : > { %2501 = vmatpush3.msra.mxu0 %v3456_v13 }
 0x2f1   : > { %2464 = vmatpush3.xpose.msk.msra.mxu1 %vm724_vm1, %v919_v38  ;;  %v3500_v38 = vld [vmem:[%s3781_s28 + $0x18] sm:$0xff] }
 0x2f2   : > { %2465 = vmatprep.subr.msk.mxu1 %vm724_vm1, %v918_v40  ;;  %2502 = vmatprep.subr.mxu0 %v3500_v38 }
 0x2f3   : > { %2503 = vmatpush3.msra.mxu0 %v3500_v38 }
 0x2f5   : > { %2466 = vmatpush3.xpose.msk.msra.mxu1 %vm724_vm1, %v918_v40  ;;  %v3507_v40 = vld [vmem:[%s3781_s28 + $0x10] sm:$0xff] }
 0x2f6   : > { %2467 = vmatprep.subr.msk.mxu1 %vm724_vm1, %v917_v42  ;;  %2504 = vmatprep.subr.mxu0 %v3507_v40 }
 0x2f7   : > { %2505 = vmatpush3.msra.mxu0 %v3507_v40 }
 0x2f9   : > { %2468 = vmatpush3.xpose.msk.msra.mxu1 %vm724_vm1, %v917_v42  ;;  %v3514_v42 = vld [vmem:[%s3781_s28 + $0x8] sm:$0xff] }
 0x2fa   : > { %2469 = vmatprep.subr.msk.mxu1 %vm724_vm1, %v916_v44  ;;  %2506 = vmatprep.subr.mxu0 %v3514_v42 }
 0x2fb   : > { %2507 = vmatpush3.msra.mxu0 %v3514_v42 }
 0x2fd   : > { %2470 = vmatpush3.xpose.msk.msra.mxu1 %vm724_vm1, %v916_v44  ;;  %v3521_v44 = vld [vmem:[%s3781_s28] sm:$0xff] }
 0x2fe   : > { %2471 = vmatprep.subr.msk.mxu1 %vm724_vm1, %v915_v46  ;;  %2508 = vmatprep.subr.mxu0 %v3521_v44 }
 0x2ff   : > { %2509 = vmatpush3.msra.mxu0 %v3521_v44 }
 0x301   : > { %2472 = vmatpush3.xpose.msk.msra.mxu1 %vm724_vm1, %v915_v46 }
 0x302   : > { %2473 = vmatprep.subr.msk.mxu1 %vm724_vm1, %v914_v48 }
 0x305   : > { %2474 = vmatpush3.xpose.msk.msra.mxu1 %vm724_vm1, %v914_v48 }
 0x308   : > { %2476 = vmatmul.mubr.msk.f32.vlgmr.msra.gmra.mxu1 %vm724_vm1, %v3173_v6 }
 0x309   : > { %2580 = vmatprep.mubr.msk.f32.mxu1 %vm724_vm1, %v3284_v37 }
 0x35a   : > { %v3343_v49 = vpop.permute.xlu1 %1249 }
 0x35b   : > { %v1268_v50 = vmul.f32 %v3343_v49, %v3186_v10  ;;  %v1266_v53 = vmul.f32 %v3343_v49, %v3206_v16  ;;  %v1264_v59 = vmul.f32 %v3343_v49, %v3224_v20  ;;  %v1262_v1 = vmul.f32 %v3343_v49, %v3242_v25 }
 0x35c   : > { %v1260_v14 = vmul.f32 %v3343_v49, %v3260_v29  ;;  %v1258_v17 = vmul.f32 %v3343_v49, %v3282_v36  ;;  %v1256_v22 = vmul.f32 %v3343_v49, %v3304_v41  ;;  %v1254_v26 = vmul.f32 %v3343_v49, %v3322_v45 }
 0x35d   : > { %2548 = vmatprep.subr.msk.mxu1 %vm724_vm1, %v1268_v50 }
 0x35e   : > { %v3348_v51 = vpop.permute.xlu1 %1247  ;;  %2549 = vmatpush3.xpose.msk.msra.mxu1 %vm724_vm1, %v1268_v50 }
 0x35f   : > { %v1267_v52 = vmul.f32 %v3348_v51, %v3193_v12  ;;  %v1265_v56 = vmul.f32 %v3348_v51, %v3215_v18  ;;  %v1263_v62 = vmul.f32 %v3348_v51, %v3233_v23  ;;  %v1261_v7 = vmul.f32 %v3348_v51, %v3251_v27 }
 0x360   : > { %v1259_v15 = vmul.f32 %v3348_v51, %v3269_v32  ;;  %v1257_v19 = vmul.f32 %v3348_v51, %v3295_v39  ;;  %v1255_v24 = vmul.f32 %v3348_v51, %v3313_v43  ;;  %v1253_v28 = vmul.f32 %v3348_v51, %v3331_v47 }
 0x361   : > { %2550 = vmatprep.subr.msk.mxu1 %vm724_vm1, %v1267_v52 }
 0x362   : > { %2551 = vmatpush3.xpose.msk.msra.mxu1 %vm724_vm1, %v1267_v52 }
 0x363   : > { %2552 = vmatprep.subr.msk.mxu1 %vm724_vm1, %v1266_v53 }
 0x366   : > { %2553 = vmatpush3.xpose.msk.msra.mxu1 %vm724_vm1, %v1266_v53 }
 0x367   : > { %2554 = vmatprep.subr.msk.mxu1 %vm724_vm1, %v1265_v56 }
 0x36a   : > { %2555 = vmatpush3.xpose.msk.msra.mxu1 %vm724_vm1, %v1265_v56 }
 0x36b   : > { %2556 = vmatprep.subr.msk.mxu1 %vm724_vm1, %v1264_v59 }
 0x36e   : > { %2557 = vmatpush3.xpose.msk.msra.mxu1 %vm724_vm1, %v1264_v59 }
 0x36f   : > { %2558 = vmatprep.subr.msk.mxu1 %vm724_vm1, %v1263_v62 }
 0x372   : > { %2559 = vmatpush3.xpose.msk.msra.mxu1 %vm724_vm1, %v1263_v62 }
 0x373   : > { %2560 = vmatprep.subr.msk.mxu1 %vm724_vm1, %v1262_v1 }
 0x376   : > { %2561 = vmatpush3.xpose.msk.msra.mxu1 %vm724_vm1, %v1262_v1 }
 0x377   : > { %2562 = vmatprep.subr.msk.mxu1 %vm724_vm1, %v1261_v7 }
 0x37a   : > { %2563 = vmatpush3.xpose.msk.msra.mxu1 %vm724_vm1, %v1261_v7 }
 0x37b   : > { %2564 = vmatprep.subr.msk.mxu1 %vm724_vm1, %v1260_v14 }
 0x37e   : > { %2565 = vmatpush3.xpose.msk.msra.mxu1 %vm724_vm1, %v1260_v14 }
 0x37f   : > { %2566 = vmatprep.subr.msk.mxu1 %vm724_vm1, %v1259_v15 }
 0x382   : > { %2567 = vmatpush3.xpose.msk.msra.mxu1 %vm724_vm1, %v1259_v15 }
 0x383   : > { %2568 = vmatprep.subr.msk.mxu1 %vm724_vm1, %v1258_v17 }
 0x386   : > { %2569 = vmatpush3.xpose.msk.msra.mxu1 %vm724_vm1, %v1258_v17 }
 0x387   : > { %2570 = vmatprep.subr.msk.mxu1 %vm724_vm1, %v1257_v19 }
 0x38a   : > { %2571 = vmatpush3.xpose.msk.msra.mxu1 %vm724_vm1, %v1257_v19 }
 0x38b   : > { %2572 = vmatprep.subr.msk.mxu1 %vm724_vm1, %v1256_v22 }
 0x38e   : > { %2573 = vmatpush3.xpose.msk.msra.mxu1 %vm724_vm1, %v1256_v22 }
 0x38f   : > { %2574 = vmatprep.subr.msk.mxu1 %vm724_vm1, %v1255_v24 }
 0x392   : > { %2575 = vmatpush3.xpose.msk.msra.mxu1 %vm724_vm1, %v1255_v24 }
 0x393   : > { %2576 = vmatprep.subr.msk.mxu1 %vm724_vm1, %v1254_v26 }
 0x396   : > { %2577 = vmatpush3.xpose.msk.msra.mxu1 %vm724_vm1, %v1254_v26 }
 0x397   : > { %2578 = vmatprep.subr.msk.mxu1 %vm724_vm1, %v1253_v28 }
 0x39a   : > { %2579 = vmatpush3.xpose.msk.msra.mxu1 %vm724_vm1, %v1253_v28 }
 0x39d   : > { %2581 = vmatmul.mubr.msk.f32.vlgmr.msra.gmra.mxu1 %vm724_vm1, %v3271_v33 }
 0x3c8   : > { %v2477_v30 = vpop.f32.mrf.mxu1 }
 0x3c9   : > { %v1080_v31 = vmul.f32 0.17677669, %v2477_v30 }
 0x3ca   : > { %v1070_v34 = vpop.f32.mrf.mxu1 }
 0x3cb   : > { %v1079_v35 = vmul.f32 0.17677669, %v1070_v34  ;;  %1083 = vmax.xlane.f32.xlu1 %v1080_v31 }
 0x3cd   : > { %1081 = vmax.xlane.f32.xlu0 %v1079_v35 }
 0x3dc   : > { %930 = vrot.lane.b32.xlu1 %v3175_v9, %s2891_s19 }
 0x3e3   : > { %932 = vrot.lane.b32.xlu0 %v3173_v6, %s2891_s19 }
 0x454   : > { %v1084_v46 = vpop.xlane.xlu1 %1083 }
 0x455   : > { %v1086_v48 = vsub.f32 %v1080_v31, %v1084_v46 }
 0x456   : > { %v1082_v49 = vpop.xlane.xlu0 %1081 }
 0x457   : > { %v1085_v50 = vsub.f32 %v1079_v35, %v1082_v49  ;;  %v1089_v51 = vmul.f32 1.442695, %v1086_v48  ;;  %v1587_v49 = vld [vmem:[%s3085_s11 + $0x18] sm:$0xff] }
 0x458   : > { %v931_v6 = vpop.permute.xlu1 %930  ;;  %2653 = vmatprep.subr.mxu1 %v1587_v49 }
 0x459   : > { %v1087_v52 = vmul.f32 1.442695, %v1085_v50  ;;  %v950_v15 = vmul.f32 %v931_v6, %v3193_v12  ;;  %v948_v19 = vmul.f32 %v931_v6, %v3215_v18  ;;  %v946_v24 = vmul.f32 %v931_v6, %v3233_v23  ;;  %v1586_v50 = vld [vmem:[%s3085_s11 + $0x10] sm:$0xff]  ;;  %2654 = vmatpush3.msra.mxu1 %v1587_v49 }
 0x45a   : > { %v933_v53 = vpop.permute.xlu0 %932  ;;  %v944_v28 = vmul.f32 %v931_v6, %v3251_v27  ;;  %v940_v34 = vmul.f32 %v931_v6, %v3295_v39  ;;  %v938_v35 = vmul.f32 %v931_v6, %v3313_v43  ;;  %v936_v48 = vmul.f32 %v931_v6, %v3331_v47  ;;  %2655 = vmatprep.subr.mxu1 %v1586_v50 }
 0x45b   : > { %2763 = vpow2.f32 %v1087_v52  ;;  %v951_v56 = vmul.f32 %v933_v53, %v3186_v10  ;;  %v949_v17 = vmul.f32 %v933_v53, %v3206_v16  ;;  %v947_v22 = vmul.f32 %v933_v53, %v3224_v20  ;;  %2656 = vmatpush3.msra.mxu1 %v1586_v50 }
 0x45c   : > { %2765 = vpow2.f32 %v1089_v51  ;;  %v945_v26 = vmul.f32 %v933_v53, %v3242_v25  ;;  %v943_v30 = vmul.f32 %v933_v53, %v3260_v29  ;;  %v941_v31 = vmul.f32 %v933_v53, %v3282_v36 }
 0x45d   : > { %2513 = vmatprep.subr.mxu0 %v951_v56  ;;  %v2582_v9 = vpop.f32.mrf.mxu1  ;;  %v937_v46 = vmul.f32 %v933_v53, %v3322_v45 }
 0x45e   : > { %v3530_v59 = vmul.f32 0.17677669, %v2582_v9 }
 0x45f   : > { %v1409_v62 = vpop.f32.mrf.mxu1 }
 0x460   : > { %v3532_v1 = vmul.f32 0.17677669, %v1409_v62  ;;  %1422 = vmax.xlane.f32.xlu1 %v3530_v59 }
 0x462   : > { %1420 = vmax.xlane.f32.xlu0 %v3532_v1 }
 0x468   : > { %v3536_v7 = vpop.eup %2763 }
 0x469   : > { %v3538_v14 = vpop.eup %2765  ;;  %2510 = vmatprep.mubr.f32.mxu0 %v3536_v7 }
 0x46a   : > { %2511 = vmatmul.mubr.f32.vlgmr.msra.gmra.mxu0 %v3538_v14 }
 0x46b   : > { %2514 = vmatpush3.msra.mxu0 %v951_v56 }
 0x46c   : > { %2515 = vmatprep.subr.mxu0 %v950_v15 }
 0x46d   : > { %2516 = vmatpush3.msra.mxu0 %v950_v15 }
 0x46e   : > { %2517 = vmatprep.subr.mxu0 %v949_v17 }
 0x46f   : > { %2518 = vmatpush3.msra.mxu0 %v949_v17 }
 0x470   : > { %2519 = vmatprep.subr.mxu0 %v948_v19 }
 0x471   : > { %2520 = vmatpush3.msra.mxu0 %v948_v19  ;;  %1269 = vrot.lane.b32.xlu1 %v3284_v37, %s2891_s19  ;;  %v942_v37 = vmul.f32 %v931_v6, %v3269_v32 }
 0x472   : > { %2521 = vmatprep.subr.mxu0 %v947_v22 }
 0x473   : > { %2522 = vmatpush3.msra.mxu0 %v947_v22 }
 0x474   : > { %2523 = vmatprep.subr.mxu0 %v946_v24 }
 0x475   : > { %2524 = vmatpush3.msra.mxu0 %v946_v24 }
 0x476   : > { %2525 = vmatprep.subr.mxu0 %v945_v26 }
 0x477   : > { %2526 = vmatpush3.msra.mxu0 %v945_v26 }
 0x478   : > { %2527 = vmatprep.subr.mxu0 %v944_v28  ;;  %1271 = vrot.lane.b32.xlu0 %v3271_v33, %s2891_s19  ;;  %v939_v33 = vmul.f32 %v933_v53, %v3304_v41 }
 0x479   : > { %2528 = vmatpush3.msra.mxu0 %v944_v28 }
 0x47a   : > { %2529 = vmatprep.subr.mxu0 %v943_v30 }
 0x47b   : > { %2530 = vmatpush3.msra.mxu0 %v943_v30 }
 0x47c   : > { %2531 = vmatprep.subr.mxu0 %v942_v37 }
 0x47d   : > { %2532 = vmatpush3.msra.mxu0 %v942_v37 }
 0x47e   : > { %2533 = vmatprep.subr.mxu0 %v941_v31 }
 0x47f   : > { %2534 = vmatpush3.msra.mxu0 %v941_v31 }
 0x480   : > { %2535 = vmatprep.subr.mxu0 %v940_v34 }
 0x481   : > { %2536 = vmatpush3.msra.mxu0 %v940_v34 }
 0x482   : > { %2537 = vmatprep.subr.mxu0 %v939_v33 }
 0x483   : > { %2538 = vmatpush3.msra.mxu0 %v939_v33 }
 0x484   : > { %2539 = vmatprep.subr.mxu0 %v938_v35 }
 0x485   : > { %2540 = vmatpush3.msra.mxu0 %v938_v35 }
 0x486   : > { %2541 = vmatprep.subr.mxu0 %v937_v46 }
 0x487   : > { %2542 = vmatpush3.msra.mxu0 %v937_v46 }
 0x488   : > { %2543 = vmatprep.subr.mxu0 %v936_v48 }
 0x489   : > { %2544 = vmatpush3.msra.mxu0 %v936_v48 }
 0x48a   : > { %2583 = vmatprep.subr.mxu0 %v3361_v54 }
 0x4eb   : > { %v1421_v51 = vpop.xlane.xlu0 %1420 }
 0x4ec   : > { %v1424_v52 = vsub.f32 %v3532_v1, %v1421_v51  ;;  %v1423_v1 = vpop.xlane.xlu1 %1422 }
 0x4ee   : > { %v1426_v9 = vmul.f32 1.442695, %v1424_v52 }
 0x52a   : > { %v2512_v56 = vpop.f32.mrf.mxu0 }
 0x52b   : > { %2767 = vrcp.f32 %v2512_v56 }
 0x52c   : > { %v1157_v53 = vpop.f32.mrf.mxu0 }
 0x52d   : > { %2769 = vrcp.f32 %v1157_v53 }
 0x52e   : > { %2771 = vpow2.f32 %v1426_v9 }
 0x538   : > { %v2768_v62 = vpop.eup %2767 }
 0x539   : > { %v1169_v17 = vmul.f32 %v2768_v62, %v3538_v14 }
 0x53a   : > { %v2770_v6 = vpop.eup %2769 }
 0x53b   : > { %v1168_v15 = vmul.f32 %v2770_v6, %v3536_v7  ;;  %v3567_v19 = vpop.eup %2771 }
 0x53d   : > { %2545 = vmatprep.mubr.f32.mxu0 %v1168_v15 }
 0x53e   : > { %2546 = vmatmul.mubr.f32.vlgmr.msra.gmra.mxu0 %v1169_v17 }
 0x53f   : > { %2584 = vmatpush3.msra.mxu0 %v3361_v54  ;;  %2615 = vmatprep.mubr.f32.mxu0 %v3567_v19  ;;  %v1425_v54 = vsub.f32 %v3530_v59, %v1423_v1 }
 0x540   : > { %2585 = vmatprep.subr.mxu0 %v3366_v55 }
 0x541   : > { %2586 = vmatpush3.msra.mxu0 %v3366_v55  ;;  %v1428_v55 = vmul.f32 1.442695, %v1425_v54 }
 0x542   : > { %2587 = vmatprep.subr.mxu0 %v3375_v57 }
 0x543   : > { %2588 = vmatpush3.msra.mxu0 %v3375_v57  ;;  %2773 = vpow2.f32 %v1428_v55  ;;  %v1272_v57 = vpop.permute.xlu0 %1271 }
 0x544   : > { %2589 = vmatprep.subr.mxu0 %v3384_v58 }
 0x545   : > { %2590 = vmatpush3.msra.mxu0 %v3384_v58  ;;  %v1270_v58 = vpop.permute.xlu1 %1269 }
 0x546   : > { %2591 = vmatprep.subr.mxu0 %v3393_v60 }
 0x547   : > { %2592 = vmatpush3.msra.mxu0 %v3393_v60  ;;  %v1290_v60 = vmul.f32 %v1272_v57, %v3186_v10  ;;  %v1286_v10 = vmul.f32 %v1272_v57, %v3224_v20  ;;  %v1281_v20 = vmul.f32 %v1270_v58, %v3269_v32  ;;  %v1276_v32 = vmul.f32 %v1272_v57, %v3322_v45 }
 0x548   : > { %2593 = vmatprep.subr.mxu0 %v3402_v61 }
 0x549   : > { %2594 = vmatpush3.msra.mxu0 %v3402_v61 }
 0x54a   : > { %2595 = vmatprep.subr.mxu0 %v3411_v63 }
 0x54b   : > { %2596 = vmatpush3.msra.mxu0 %v3411_v63  ;;  %v1289_v63 = vmul.f32 %v1270_v58, %v3193_v12  ;;  %v1284_v12 = vmul.f32 %v1272_v57, %v3242_v25  ;;  %v1279_v25 = vmul.f32 %v1270_v58, %v3295_v39  ;;  %v1585_v39 = vld [vmem:[%s3085_s11 + $0x8] sm:$0xff] }
 0x54c   : > { %2597 = vmatprep.subr.mxu0 %v3420_v0  ;;  %2657 = vmatprep.subr.mxu1 %v1585_v39 }
 0x54d   : > { %2598 = vmatpush3.msra.mxu0 %v3420_v0  ;;  %v1288_v0 = vmul.f32 %v1272_v57, %v3206_v16  ;;  %v1283_v16 = vmul.f32 %v1270_v58, %v3251_v27  ;;  %v1278_v27 = vmul.f32 %v1272_v57, %v3304_v41  ;;  %2658 = vmatpush3.msra.mxu1 %v1585_v39  ;;  %v1584_v41 = vld [vmem:[%s3085_s11] sm:$0xff] }
 0x54e   : > { %2599 = vmatprep.subr.mxu0 %v3429_v2  ;;  %2659 = vmatprep.subr.mxu1 %v1584_v41 }
 0x54f   : > { %2600 = vmatpush3.msra.mxu0 %v3429_v2  ;;  %v1287_v2 = vmul.f32 %v1270_v58, %v3215_v18  ;;  %v1282_v18 = vmul.f32 %v1272_v57, %v3260_v29  ;;  %v1277_v29 = vmul.f32 %v1270_v58, %v3313_v43  ;;  %2660 = vmatpush3.msra.mxu1 %v1584_v41  ;;  %v2266_v41 = vld [vmem:[%s661_s16] ss:$0 sm:$0xff] }
 0x550   : > { %2601 = vmatprep.subr.mxu0 %v3438_v3  ;;  %v3602_v61 = vpop.eup %2773 }
 0x551   : > { %2602 = vmatpush3.msra.mxu0 %v3438_v3  ;;  %v1285_v3 = vmul.f32 %v1270_v58, %v3233_v23  ;;  %v1280_v23 = vmul.f32 %v1272_v57, %v3282_v36  ;;  %v1275_v36 = vmul.f32 %v1270_v58, %v3331_v47 }
 0x552   : > { %2603 = vmatprep.subr.mxu0 %v3447_v11 }
 0x553   : > { %2604 = vmatpush3.msra.mxu0 %v3447_v11 }
 0x554   : > { %2605 = vmatprep.subr.mxu0 %v3456_v13 }
 0x555   : > { %2606 = vmatpush3.msra.mxu0 %v3456_v13 }
 0x556   : > { %2607 = vmatprep.subr.mxu0 %v3500_v38 }
 0x557   : > { %2608 = vmatpush3.msra.mxu0 %v3500_v38 }
 0x558   : > { %2609 = vmatprep.subr.mxu0 %v3507_v40 }
 0x559   : > { %2610 = vmatpush3.msra.mxu0 %v3507_v40 }
 0x55a   : > { %2611 = vmatprep.subr.mxu0 %v3514_v42 }
 0x55b   : > { %2612 = vmatpush3.msra.mxu0 %v3514_v42 }
 0x55c   : > { %2613 = vmatprep.subr.mxu0 %v3521_v44 }
 0x55d   : > { %2614 = vmatpush3.msra.mxu0 %v3521_v44  ;;  %v2260_v44 = vld [vmem:[%s655_s24] ss:$0 sm:$0xff]  ;;  %s3782_s24 = sld [smem:[#allocation12_spill]] }
 0x55e   : > { %2616 = vmatmul.mubr.f32.vlgmr.msra.gmra.mxu0 %v3602_v61  ;;  %2618 = vmatprep.subr.mxu0 %v1290_v60 }
 0x55f   : > { %2619 = vmatpush3.msra.mxu0 %v1290_v60 }
 0x560   : > { %2620 = vmatprep.subr.mxu0 %v1289_v63 }
 0x561   : > { %2621 = vmatpush3.msra.mxu0 %v1289_v63 }
 0x562   : > { %2622 = vmatprep.subr.mxu0 %v1288_v0 }
 0x563   : > { %2623 = vmatpush3.msra.mxu0 %v1288_v0  ;;  %v1771_v1 = vld [vmem:[%s3782_s24 + $0x8] sm:$0xff] }
 0x564   : > { %2624 = vmatprep.subr.mxu0 %v1287_v2 }
 0x565   : > { %2625 = vmatpush3.msra.mxu0 %v1287_v2 }
 0x566   : > { %2626 = vmatprep.subr.mxu0 %v1286_v10 }
 0x567   : > { %2627 = vmatpush3.msra.mxu0 %v1286_v10 }
 0x568   : > { %2628 = vmatprep.subr.mxu0 %v1285_v3 }
 0x569   : > { %2629 = vmatpush3.msra.mxu0 %v1285_v3 }
 0x56a   : > { %2630 = vmatprep.subr.mxu0 %v1284_v12 }
 0x56b   : > { %2631 = vmatpush3.msra.mxu0 %v1284_v12 }
 0x56c   : > { %2632 = vmatprep.subr.mxu0 %v1283_v16 }
 0x56d   : > { %2633 = vmatpush3.msra.mxu0 %v1283_v16 }
 0x56e   : > { %2634 = vmatprep.subr.mxu0 %v1282_v18 }
 0x56f   : > { %2635 = vmatpush3.msra.mxu0 %v1282_v18 }
 0x570   : > { %2636 = vmatprep.subr.mxu0 %v1281_v20 }
 0x571   : > { %2637 = vmatpush3.msra.mxu0 %v1281_v20 }
 0x572   : > { %2638 = vmatprep.subr.mxu0 %v1280_v23 }
 0x573   : > { %2639 = vmatpush3.msra.mxu0 %v1280_v23 }
 0x574   : > { %2640 = vmatprep.subr.mxu0 %v1279_v25 }
 0x575   : > { %2641 = vmatpush3.msra.mxu0 %v1279_v25 }
 0x576   : > { %2642 = vmatprep.subr.mxu0 %v1278_v27 }
 0x577   : > { %2643 = vmatpush3.msra.mxu0 %v1278_v27 }
 0x578   : > { %2644 = vmatprep.subr.mxu0 %v1277_v29 }
 0x579   : > { %2645 = vmatpush3.msra.mxu0 %v1277_v29  ;;  %v2265_v29 = vld [vmem:[%s658_s17] ss:$0 sm:$0xff] }
 0x57a   : > { %2646 = vmatprep.subr.mxu0 %v1276_v32 }
 0x57b   : > { %2647 = vmatpush3.msra.mxu0 %v1276_v32 }
 0x57c   : > { %2648 = vmatprep.subr.mxu0 %v1275_v36 }
 0x57d   : > { %2649 = vmatpush3.msra.mxu0 %v1275_v36 }
 0x5fe   : > { %v2547_v11 = vpop.f32.mrf.mxu0 }
 0x600   : > { %v1236_v43 = vpop.f32.mrf.mxu0 }
 0x601   : > { %2661 = vmatprep.mubr.msk.f32.mxu1 %vm724_vm1, %v1236_v43 }
 0x602   : > { %2662 = vmatmul.mubr.msk.f32.vlgmr.msra.gmra.mxu1 %vm724_vm1, %v2547_v11 }
 0x61e   : > { %v2617_v45 = vpop.f32.mrf.mxu0 }
 0x61f   : > { %2775 = vrcp.f32 %v2617_v45 }
 0x620   : > { %v1496_v13 = vpop.f32.mrf.mxu0 }
 0x621   : > { %2777 = vrcp.f32 %v1496_v13  ;;  %v1921_v13 = vld [vmem:[%s3111_s27 + $0x38] sm:$0xff] }
 0x622   : > { %2681 = vmatprep.subr.mxu1 %v1921_v13 }
 0x623   : > { %2682 = vmatpush3.msra.mxu1 %v1921_v13 }
 0x62c   : > { %v2776_v47 = vpop.eup %2775 }
 0x62d   : > { %v1508_v42 = vmul.f32 %v2776_v47, %v3602_v61  ;;  %v1920_v47 = vld [vmem:[%s3111_s27 + $0x30] sm:$0xff] }
 0x62e   : > { %v2778_v38 = vpop.eup %2777  ;;  %2683 = vmatprep.subr.mxu1 %v1920_v47 }
 0x62f   : > { %v1507_v40 = vmul.f32 %v2778_v38, %v3567_v19  ;;  %v1772_v19 = vld [vmem:[%s3782_s24 + $0x10] sm:$0xff]  ;;  %2684 = vmatpush3.msra.mxu1 %v1920_v47  ;;  %v1919_v38 = vld [vmem:[%s3111_s27 + $0x28] sm:$0xff] }
 0x630   : > { %2685 = vmatprep.subr.mxu1 %v1919_v38 }
 0x631   : > { %2650 = vmatprep.mubr.f32.mxu0 %v1507_v40  ;;  %2686 = vmatpush3.msra.mxu1 %v1919_v38  ;;  %v1918_v40 = vld [vmem:[%s3111_s27 + $0x20] sm:$0xff] }
 0x632   : > { %2651 = vmatmul.mubr.f32.vlgmr.msra.gmra.mxu0 %v1508_v42  ;;  %2687 = vmatprep.subr.mxu1 %v1918_v40  ;;  %v1917_v42 = vld [vmem:[%s3111_s27 + $0x18] sm:$0xff] }
 0x633   : > { %2688 = vmatpush3.msra.mxu1 %v1918_v40 }
 0x634   : > { %2689 = vmatprep.subr.mxu1 %v1917_v42 }
 0x635   : > { %2690 = vmatpush3.msra.mxu1 %v1917_v42 }
 0x6c2   : > { %v2663_v59 = vpop.f32.mrf.mxu1 }
 0x6c3   : > { %v1679_v7 = vadd.f32 %v2663_v59, %v2260_v44  ;;  %v1915_v59 = vld [vmem:[%s3111_s27 + $0x8] sm:$0xff] }
 0x6c4   : > { %v1673_v14 = vpop.f32.mrf.mxu1 }
 0x6c5   : > { %v3633_v22 = vadd.f32 %v1679_v7, %v3128_v5  ;;  %v1674_v24 = vadd.f32 %v2260_v44, %v1673_v14  ;;  %v1914_v7 = vld [vmem:[%s3111_s27] sm:$0xff] }
 0x6c7   : > { %v3636_v26 = vadd.f32 %v1674_v24, %v3126_v4  ;;  %v1701_v28 = vsel %vm724_vm1, %v3633_v22, 0.0 }
 0x6c8   : > { %1702 = vadd.xlane.f32.xlu1 %v1701_v28 }
 0x6c9   : > { %v1698_v30 = vsel %vm724_vm1, %v3636_v26, 0.0 }
 0x6ca   : > { %1699 = vadd.xlane.f32.xlu0 %v1698_v30 }
 0x6f2   : > { %v2652_v37 = vpop.f32.mrf.mxu0 }
 0x6f4   : > { %v1575_v31 = vpop.f32.mrf.mxu0 }
 0x6f5   : > { %2664 = vmatprep.mubr.msk.f32.mxu1 %vm724_vm1, %v1575_v31 }
 0x6f6   : > { %2665 = vmatmul.mubr.msk.f32.gmra.mxu1 %vm724_vm1, %v2652_v37 }
 0x751   : > { %v1703_v5 = vpop.xlane.xlu1 %1702 }
 0x752   : > { %v1711_v34 = vmul.f32 0.03125, %v1703_v5 }
 0x753   : > { %v1700_v46 = vpop.xlane.xlu0 %1699 }
 0x754   : > { %v1715_v33 = vsub.f32 %v3633_v22, %v1711_v34  ;;  %v1710_v50 = vmul.f32 0.03125, %v1700_v46 }
 0x756   : > { %v1719_v4 = vmul.f32 %v1715_v33, %v1715_v33  ;;  %v1714_v53 = vsub.f32 %v3636_v26, %v1710_v50  ;;  %v2267_v50 = vld [vmem:[%s664_s5] ss:$0 sm:$0xff] }
 0x758   : > { %v1725_v35 = vsel %vm724_vm1, %v1719_v4, 0.0  ;;  %v1718_v15 = vmul.f32 %v1714_v53, %v1714_v53 }
 0x759   : > { %1726 = vadd.xlane.f32.xlu1 %v1725_v35 }
 0x75a   : > { %v1722_v17 = vsel %vm724_vm1, %v1718_v15, 0.0 }
 0x7b6   : > { %v2666_v48 = vpop.f32.mrf.mxu1 }
 0x7b7   : > { %v1689_v51 = vadd.f32 %v2666_v48, %v2260_v44 }
 0x7b8   : > { %v1683_v49 = vpop.f32.mrf.mxu1 }
 0x7b9   : > { %v1684_v52 = vadd.f32 %v2260_v44, %v1683_v49  ;;  %v3651_v9 = vadd.f32 %v1689_v51, %v3141_v21  ;;  %v1770_v21 = vld [vmem:[%s3782_s24] sm:$0xff]  ;;  %v1916_v44 = vld [vmem:[%s3111_s27 + $0x10] sm:$0xff] }
 0x7ba   : > { %2691 = vmatprep.subr.mxu1 %v1916_v44 }
 0x7bb   : > { %v3647_v56 = vadd.f32 %v1684_v52, %v3134_v8  ;;  %v1707_v6 = vsel %vm724_vm1, %v3651_v9, 0.0  ;;  %v1773_v8 = vld [vmem:[%s3782_s24 + $0x18] sm:$0xff]  ;;  %2692 = vmatpush3.msra.mxu1 %v1916_v44 }
 0x7bc   : > { %2667 = vmatprep.subr.mxu0 %v1773_v8  ;;  %2693 = vmatprep.subr.mxu1 %v1915_v59 }
 0x7bd   : > { %v1704_v62 = vsel %vm724_vm1, %v3647_v56, 0.0  ;;  %2668 = vmatpush3.msra.mxu0 %v1773_v8  ;;  %2694 = vmatpush3.msra.mxu1 %v1915_v59 }
 0x7be   : > { %1705 = vadd.xlane.f32.xlu0 %v1704_v62  ;;  %2669 = vmatprep.subr.mxu0 %v1772_v19 }
 0x7bf   : > { %2670 = vmatpush3.msra.mxu0 %v1772_v19  ;;  %2695 = vmatprep.subr.mxu1 %v1914_v7 }
 0x7c0   : > { %2671 = vmatprep.subr.mxu0 %v1771_v1  ;;  %2696 = vmatpush3.msra.mxu1 %v1914_v7  ;;  %v2272_v7 = vld [vmem:[%s672_s26] ss:$0 sm:$0xff]  ;;  %s2823_s26 = scalar_lea.vmem %s2042_s20, 512 }
 0x7c1   : > { %2672 = vmatpush3.msra.mxu0 %v1771_v1  ;;  %p2824_p2 = scmp.ne.s32.totalorder %s2042_s20, %s2823_s26  ;;  %p2831_p6 = scmp.lt.s32.totalorder %s2823_s26, %s2823_s26 }
 0x7c2   : > { %1708 = vadd.xlane.f32.xlu0 %v1707_v6  ;;  %2673 = vmatprep.subr.mxu0 %v1770_v21 }
 0x7c3   : > { %2674 = vmatpush3.msra.mxu0 %v1770_v21  ;;  %p2825_p3 = pnand %p2824_p2, %p2714_p1  ;;  %p2832_p10 = por %p2831_p6, %p2830_p5 }
 0x7c5   : > { %p2826_p4 = pneg %p2825_p3 }
 0x7c6   : > { %1723 = vadd.xlane.f32.xlu0 %v1722_v17 }
 0x7c7   : > { %p2833_p12 = pnand %p2832_p10, %p2826_p4 }
 0x7e2   : > { %v1727_v54 = vpop.xlane.xlu1 %1726 }
 0x7e3   : > { %v1735_v55 = vmul.f32 0.03125, %v1727_v54 }
 0x7e5   : > { %v1739_v61 = vadd.f32 1e-05, %v1735_v55 }
 0x7e7   : > { %2779 = vrsqrt.f32 %v1739_v61 }
 0x7f4   : > { %v2780_v25 = vpop.eup %2779 }
 0x7f5   : > { %v1747_v27 = vmul.f32 %v2780_v25, %v1715_v33 }
 0x7f7   : > { %v1757_v39 = vmul.f32 %v2265_v29, %v1747_v27 }
 0x7f9   : > { %v1767_v45 = vadd.f32 %v2266_v41, %v1757_v39 }
 0x847   : > { %v1706_v57 = vpop.xlane.xlu0 %1705 }
 0x848   : > { %v1712_v58 = vmul.f32 0.03125, %v1706_v57 }
 0x84a   : > { %v1716_v60 = vsub.f32 %v3647_v56, %v1712_v58 }
 0x84b   : > { %v1709_v63 = vpop.xlane.xlu0 %1708 }
 0x84c   : > { %v1713_v0 = vmul.f32 0.03125, %v1709_v63  ;;  %v1720_v2 = vmul.f32 %v1716_v60, %v1716_v60 }
 0x84e   : > { %v1717_v10 = vsub.f32 %v3651_v9, %v1713_v0  ;;  %v1728_v3 = vsel %vm724_vm1, %v1720_v2, 0.0 }
 0x84f   : > { %1729 = vadd.xlane.f32.xlu0 %v1728_v3  ;;  %v1724_v12 = vpop.xlane.xlu0 %1723 }
 0x850   : > { %v1734_v16 = vmul.f32 0.03125, %v1724_v12  ;;  %v1721_v18 = vmul.f32 %v1717_v10, %v1717_v10 }
 0x852   : > { %v1738_v20 = vadd.f32 1e-05, %v1734_v16  ;;  %v1731_v23 = vsel %vm724_vm1, %v1721_v18, 0.0 }
 0x853   : > { %1732 = vadd.xlane.f32.xlu1 %v1731_v23 }
 0x854   : > { %2781 = vrsqrt.f32 %v1738_v20 }
 0x861   : > { %v2782_v32 = vpop.eup %2781 }
 0x862   : > { %v1746_v36 = vmul.f32 %v2782_v32, %v1714_v53 }
 0x864   : > { %v1756_v11 = vmul.f32 %v2265_v29, %v1746_v36 }
 0x866   : > { %v1766_v43 = vadd.f32 %v2266_v41, %v1756_v11 }
 0x868   : > { %2675 = vmatprep.mubr.msk.f32.mxu0 %vm724_vm1, %v1766_v43 }
 0x869   : > { %2676 = vmatmul.mubr.msk.f32.vlgmr.msra.gmra.mxu0 %vm724_vm1, %v1767_v45 }
 0x8d8   : > { %v1730_v14 = vpop.xlane.xlu0 %1729 }
 0x8d9   : > { %v1736_v24 = vmul.f32 0.03125, %v1730_v14 }
 0x8db   : > { %v1740_v28 = vadd.f32 1e-05, %v1736_v24 }
 0x8dc   : > { %v1733_v30 = vpop.xlane.xlu1 %1732 }
 0x8dd   : > { %2783 = vrsqrt.f32 %v1740_v28  ;;  %v1737_v37 = vmul.f32 0.03125, %v1733_v30 }
 0x8df   : > { %v1741_v31 = vadd.f32 1e-05, %v1737_v37 }
 0x8e1   : > { %2785 = vrsqrt.f32 %v1741_v31 }
 0x8ea   : > { %v2784_v5 = vpop.eup %2783 }
 0x8eb   : > { %v1748_v34 = vmul.f32 %v2784_v5, %v1716_v60 }
 0x8ed   : > { %v1758_v33 = vmul.f32 %v2265_v29, %v1748_v34 }
 0x8ee   : > { %v2786_v4 = vpop.eup %2785 }
 0x8ef   : > { %v1768_v35 = vadd.f32 %v2266_v41, %v1758_v33  ;;  %v1749_v46 = vmul.f32 %v2786_v4, %v1717_v10 }
 0x8f1   : > { %2678 = vmatprep.mubr.msk.f32.mxu0 %vm724_vm1, %v1768_v35  ;;  %v1759_v48 = vmul.f32 %v2265_v29, %v1749_v46 }
 0x8f3   : > { %v1769_v49 = vadd.f32 %v2266_v41, %v1759_v48 }
 0x8f5   : > { %2679 = vmatmul.mubr.msk.f32.gmra.mxu0 %vm724_vm1, %v1769_v49 }
 0x929   : > { %v2677_v51 = vpop.f32.mrf.mxu0 }
 0x92a   : > { %v1865_v52 = vadd.f32 %v2677_v51, %v2267_v50 }
 0x92b   : > { %v1859_v53 = vpop.f32.mrf.mxu0 }
 0x92c   : > { %v1883_v62 = vmul.f32 0.044715, %v1865_v52  ;;  %v1860_v6 = vadd.f32 %v2267_v50, %v1859_v53  ;;  %v1879_v2 = vmul.f32 0.5, %v1865_v52 }
 0x92e   : > { %v1887_v15 = vmul.f32 %v1883_v62, %v1865_v52  ;;  %v1882_v17 = vmul.f32 0.044715, %v1860_v6  ;;  %v1878_v63 = vmul.f32 0.5, %v1860_v6 }
 0x930   : > { %v1891_v8 = vmul.f32 %v1887_v15, %v1865_v52  ;;  %v1886_v19 = vmul.f32 %v1882_v17, %v1860_v6 }
 0x932   : > { %v1895_v1 = vadd.f32 %v1891_v8, %v1865_v52  ;;  %v1890_v21 = vmul.f32 %v1886_v19, %v1860_v6 }
 0x934   : > { %v1899_v54 = vmul.f32 0.7978846, %v1895_v1  ;;  %v1894_v55 = vadd.f32 %v1890_v21, %v1860_v6 }
 0x936   : > { %2787 = vtanh.f32 %v1899_v54  ;;  %v1898_v57 = vmul.f32 0.7978846, %v1894_v55 }
 0x938   : > { %2789 = vtanh.f32 %v1898_v57 }
 0x943   : > { %v2788_v58 = vpop.eup %2787 }
 0x944   : > { %v1907_v61 = vadd.f32 1.0, %v2788_v58 }
 0x945   : > { %v2790_v60 = vpop.eup %2789 }
 0x946   : > { %v1906_v0 = vadd.f32 1.0, %v2790_v60  ;;  %v1911_v3 = vmul.f32 %v1907_v61, %v1879_v2 }
 0x948   : > { %v1910_v10 = vmul.f32 %v1906_v0, %v1878_v63 }
 0x94a   : > { %2697 = vmatprep.mubr.msk.f32.mxu1 %vm1929_vm2, %v1910_v10 }
 0x94b   : > { %2698 = vmatmul.mubr.msk.f32.vlgmr.msra.gmra.mxu1 %vm1929_vm2, %v1911_v3 }
 0x9b5   : > { %v2680_v12 = vpop.f32.mrf.mxu0 }
 0x9b6   : > { %v1875_v16 = vadd.f32 %v2680_v12, %v2267_v50 }
 0x9b7   : > { %v1869_v18 = vpop.f32.mrf.mxu0 }
 0x9b8   : > { %v1885_v20 = vmul.f32 0.044715, %v1875_v16  ;;  %v1870_v23 = vadd.f32 %v2267_v50, %v1869_v18  ;;  %v1881_v42 = vmul.f32 0.5, %v1875_v16 }
 0x9ba   : > { %v1889_v25 = vmul.f32 %v1885_v20, %v1875_v16  ;;  %v1884_v27 = vmul.f32 0.044715, %v1870_v23  ;;  %v1880_v38 = vmul.f32 0.5, %v1870_v23 }
 0x9bc   : > { %v1893_v29 = vmul.f32 %v1889_v25, %v1875_v16  ;;  %v1888_v32 = vmul.f32 %v1884_v27, %v1870_v23 }
 0x9be   : > { %v1897_v36 = vadd.f32 %v1893_v29, %v1875_v16  ;;  %v1892_v39 = vmul.f32 %v1888_v32, %v1870_v23 }
 0x9c0   : > { %v1896_v41 = vadd.f32 %v1892_v39, %v1870_v23  ;;  %v1901_v11 = vmul.f32 0.7978846, %v1897_v36 }
 0x9c2   : > { %v1900_v43 = vmul.f32 0.7978846, %v1896_v41  ;;  %2791 = vtanh.f32 %v1901_v11 }
 0x9c4   : > { %2793 = vtanh.f32 %v1900_v43 }
 0x9cf   : > { %v2792_v45 = vpop.eup %2791 }
 0x9d0   : > { %v1909_v47 = vadd.f32 1.0, %v2792_v45 }
 0x9d1   : > { %v2794_v13 = vpop.eup %2793 }
 0x9d2   : > { %v1908_v40 = vadd.f32 1.0, %v2794_v13  ;;  %v1913_v59 = vmul.f32 %v1909_v47, %v1881_v42 }
 0x9d4   : > { %v1912_v44 = vmul.f32 %v1908_v40, %v1880_v38 }
 0x9d6   : > { %2700 = vmatprep.mubr.msk.f32.mxu1 %vm1929_vm2, %v1912_v44 }
 0x9d7   : > { %2701 = vmatmul.mubr.msk.f32.gmra.mxu1 %vm1929_vm2, %v1913_v59 }
 0xa0b   : > { %v2699_v14 = vpop.f32.mrf.mxu1 }
 0xa0c   : > { %v2014_v24 = vadd.f32 %v2699_v14, %v2272_v7 }
 0xa0d   : > { %v2008_v28 = vpop.f32.mrf.mxu1 }
 0xa0e   : > { %v2028_v30 = vadd.f32 %v2014_v24, %v3633_v22  ;;  %v2009_v37 = vadd.f32 %v2272_v7, %v2008_v28 }
 0xa10   : > { %2032 = vst.msk [vmem:[#allocation5 + $0x8] sm:$0xff] %vm724_vm1, %v2028_v30  ;;  %v2027_v31 = vadd.f32 %v2009_v37, %v3636_v26 }
 0xa12   : > { %2031 = vst.msk [vmem:[#allocation5] sm:$0xff] %vm724_vm1, %v2027_v31 }
 0xa97   : > { %v2702_v5 = vpop.f32.mrf.mxu1 }
 0xa98   : > { %v2024_v34 = vadd.f32 %v2702_v5, %v2272_v7 }
 0xa99   : > { %v2018_v33 = vpop.f32.mrf.mxu1 }
 0xa9a   : > { %v2030_v4 = vadd.f32 %v2024_v34, %v3651_v9  ;;  %v2019_v35 = vadd.f32 %v2272_v7, %v2018_v33 }
 0xa9c   : > { %2034 = vst.msk [vmem:[#allocation5 + $0x18] sm:$0xff] %vm724_vm1, %v2030_v4  ;;  %v2029_v22 = vadd.f32 %v2019_v35, %v3647_v56 }
 0xa9e   : > { %2033 = vst.msk [vmem:[#allocation5 + $0x10] sm:$0xff] %vm724_vm1, %v2029_v22 }
 0xa9f   : > { %2836 = shalt.err (!%p2833_p12)
}
 0xaa0   : > { %s2893_s1 = smov 128   ;;  %s2894_s7 = smov 8  }
 0xaa1   : > { %s3783_s11 = sld [smem:[#allocation18_spill]] }
 0xaa7   : > { %2706 = dma.vmem_to_hbm [thread:$0]  (%p2714_p1), %s2042_s20, 512, %s3783_s11, [#allocation4], %s2893_s1, %s2893_s1, %s2894_s7  }
 0xaa8   : > { %2868 = dma.done.wait (%p2714_p1), [#allocation4], 512  }
 0xaa9   : > { %2870 = vsyncadd (%p2714_p1), [#allocation4], 4294966784 }
 0xaaa PF: > { %s3784_s21 = sld [smem:[#allocation10_spill]] }
 0xaab   : > { %s3785_s18 = sld [smem:[#allocation8_spill]] }
 0xaac   : > { %s3786_s19 = sld [smem:[#allocation9_spill]] }
 0xaad   : > { %s3787_s20 = sld [smem:[#allocation11_spill]] }
 0xab0   : > { %p26_p11 = scmp.ge.s32.totalorder %s3784_s21, 4  }
 0xab2   :  { %28 = sbr.rel (!%p26_p11) target bundleno = 11 (0xb), region = 154 }
 0xab7   :  { %2057 = vsyncpa [#allocation3], 1 }
 0xab8   :  { %2059 = vsyncpa [#allocation3 + $0x1], 1 }
 0xab9   :  { %2060 = vsyncpa [#allocation4], 1 }
 0xaba   :  { %2062 = vsyncpa [#allocation4 + $0x1], 1 }

</bundles_post_ra>
